<compile_context>
chip_gen: v5e
topology: v5e:2x2
jax: 0.10.0
libtpu: 0.0.40
codegen_flags: <defaults>
</compile_context>

<pallas_src>
import functools

import jax
import jax.numpy as jnp
from jax.experimental import pallas as pl
from jax.experimental.pallas import tpu as pltpu


def attention_kernel(x_ref, w_ref, b_ref, o_ref, *, seq_len, batch_tile, tile_i):
    S = seq_len
    x_tile = x_ref[...]                                      # (TB, S) f32

    # --- fused QKV projection: one lane-dense MXU matmul over all TB rows ----
    # Weights arrive pre-transposed & concatenated as [Wq^T | Wv^T | Wk^T], so
    # there is no in-kernel weight transpose and a single MXU push/drain.
    qvk = jnp.dot(x_tile.astype(w_ref.dtype), w_ref[...],
                  preferred_element_type=jnp.float32)
    qvk = qvk + b_ref[...]                                   # (TB, 3S) = [q | v | k]

    k_all = qvk[:, 2 * S:]                                   # (TB, S): keys, j on lanes
    # Exact analytic row max of the rank-1 score matrix, per batch row:
    #   s[i, j] = q_i * k_j  =>  max_j s[i, j] = q_i*max(k) if q_i >= 0
    #                                            else        q_i*min(k)
    k_max = jnp.max(k_all, axis=1, keepdims=True)            # (TB, 1)
    k_min = jnp.min(k_all, axis=1, keepdims=True)            # (TB, 1)

    # TODO(synk): for large batch tiles (TB >> 8) this unrolled row loop should
    # become a lax.fori_loop; the wrapper caps TB at 8 so the unroll stays short.
    rows = []
    for b in range(batch_tile):                              # static -> free slicing
        # q and v index the score rows (i) -> relayout the contiguous (1, 2S)
        # [q | v] slab with one tiny transpose, then slice on sublanes.
        qv_col = qvk[b:b + 1, :2 * S].T                      # (2S, 1)
        q_col = qv_col[:S, :]                                # (S, 1)
        v_col = qv_col[S:, :]                                # (S, 1)
        k_row = k_all[b:b + 1, :]                            # (1, S)
        m_col = jnp.where(q_col >= 0.0,
                          q_col * k_max[b:b + 1, :],
                          q_col * k_min[b:b + 1, :])         # (S, 1) exact row max

        # i-tiled softmax + weighted accumulation.  With tile_i == S (default
        # for S <= 512) this is a single pass; the full (S, S) probability
        # matrix is never written back to HBM either way.
        k_bcast = jnp.broadcast_to(k_row, (tile_i, S))       # hoisted (not CSE'd)
        sa = jnp.zeros((1, S), jnp.float32)
        for t in range(S // tile_i):                         # static tiles
            i0 = t * tile_i
            qb = q_col[i0:i0 + tile_i, :]                    # (tile_i, 1)
            vb = v_col[i0:i0 + tile_i, :]                    # (tile_i, 1)
            mb = m_col[i0:i0 + tile_i, :]                    # (tile_i, 1)
            p = jnp.exp(qb * k_bcast - mb)                   # (tile_i, S) unnormalized
            l = jnp.sum(p, axis=1, keepdims=True)            # (tile_i, 1) denominators
            w = vb * pl.reciprocal(l, approx=False)          # fold denom into v
            sa = sa + jnp.sum(w * p, axis=0, keepdims=True)  # (1, S)
        rows.append(sa)

    sa_all = jnp.concatenate(rows, axis=0) if batch_tile > 1 else rows[0]

    # TODO(synk): nn.Dropout(0.2) on the attention probs is eval-mode identity;
    # training-mode dropout would use pltpu.prng_seed / pltpu.prng_random_bits.
    o_ref[...] = (sa_all + x_tile).astype(o_ref.dtype)       # residual add


def fuse_attention_params(wq, wk, wv, bq, bk, bv, *, use_bf16_matmul=False):
    """Build fused [Wq^T | Wv^T | Wk^T] weight and bias ONCE at setup time.

    Hoisted out of the per-call path so the 3*S^2 concat is not re-materialized
    in HBM on every forward.
    """
    S = wq.shape[0]
    w_fused = jnp.concatenate([wq.T, wv.T, wk.T], axis=1)                 # (S, 3S)
    if use_bf16_matmul:
        # v6e/v7x MXU speedup and half the resident VMEM; accumulation stays
        # f32.  Off by default to keep the strict 1e-4 match vs the f32 ref.
        w_fused = w_fused.astype(jnp.bfloat16)
    b_fused = jnp.concatenate(
        [jnp.reshape(bq, (1, S)), jnp.reshape(bv, (1, S)), jnp.reshape(bk, (1, S))],
        axis=1).astype(jnp.float32)                                       # (1, 3S)
    return w_fused, b_fused


def attention_forward(x, w_fused, b_fused, *, tile_i=None):
    """x: (B, S) f32.  w_fused: (S, 3S) = [Wq^T|Wv^T|Wk^T].  b_fused: (1, 3S).

    NOTE: the output aliases x's HBM buffer (input_output_aliases={0: 0});
    callers must not read x after this call.
    """
    B, S = x.shape
    if B == 0:                          # matches the PyTorch early-return
        return x
    assert S % 128 == 0, "seq_length must be lane-aligned (multiple of 128)"
    if tile_i is None:
        # Single softmax pass per row; shrink for very large S (vreg pressure).
        tile_i = S if S <= 512 else 32
    assert S % tile_i == 0 and tile_i % 8 == 0

    # Batch tile: full batch in one block when small (block dims equal to the
    # array dims are exempt from the (8,128) rule -> sublane-dense I/O and a
    # single grid step); otherwise 8-row tiles so the grid keeps >= 2 steps for
    # v7x's two TensorCores while the in-kernel unrolled row loop stays short.
    if B <= 8 or B % 8 != 0:
        tb = B
    else:
        tb = 8
    grid = (B // tb,)

    # VMEM sizing from actual need: double-buffered weight slab + bias + x/out
    # blocks + softmax temporaries, with 2x headroom, clamped to [16, 64] MiB.
    w_bytes = 3 * S * S * jnp.dtype(w_fused.dtype).itemsize
    est = (2 * w_bytes + 2 * 3 * S * 4 + 4 * tb * S * 4
           + 2 * tb * 3 * S * 4 + 2 * tile_i * S * 4)
    vmem_limit = int(min(64 * 1024 * 1024, max(16 * 1024 * 1024, 2 * est)))
    # TODO(synk): for very large S on v7x (64 MiB VMEM), single-buffer the
    # constant-index weight slab via pipeline_mode=pl.Buffered(1) and/or enable
    # the bf16 weight path in fuse_attention_params.

    kernel = functools.partial(attention_kernel, seq_len=S, batch_tile=tb,
                               tile_i=tile_i)

    cost = pl.CostEstimate(
        flops=int(B * 10 * S * S),            # ~6S^2 QKV matmul + ~4S^2 softmax/acc
        transcendentals=int(B * S * S),       # exp per score element
        bytes_accessed=int(8 * B * S + w_bytes + 12 * S),
    )

    return pl.pallas_call(
        kernel,
        out_shape=jax.ShapeDtypeStruct((B, S), x.dtype),
        grid=grid,
        in_specs=[
            pl.BlockSpec((tb, S), lambda i: (i, 0)),          # x rows (pipelined)
            pl.BlockSpec((S, 3 * S), lambda i: (0, 0)),       # fused W: VMEM-resident
            pl.BlockSpec((1, 3 * S), lambda i: (0, 0)),       # fused bias: resident
        ],
        out_specs=pl.BlockSpec((tb, S), lambda i: (i, 0)),    # dense output blocks
        input_output_aliases={0: 0},                          # out reuses x's HBM buffer
        compiler_params=pltpu.CompilerParams(
            dimension_semantics=("parallel",),                # batch tiles -> both v7x TCs
            vmem_limit_bytes=vmem_limit,
        ),
        cost_estimate=cost,
    )(x, w_fused, b_fused)


def attention_reference(x, wq, wk, wv, bq, bk, bv):
    q = x @ wq.T + bq
    k = x @ wk.T + bk
    v = x @ wv.T + bv
    attn = jax.nn.softmax(q[:, :, None] * k[:, None, :], axis=-1)
    sa = jnp.einsum("bi,bij->bj", v, attn, preferred_element_type=jnp.float32)
    return sa + x


if __name__ == "__main__":
    B, S = 2, 128  # batch=2, seq_length=128 (lane-aligned)

    key = jax.random.PRNGKey(0)
    kx, kq, kk, kv, kbq, kbk, kbv = jax.random.split(key, 7)

    bound = 1.0 / float(S) ** 0.5
    x = jax.random.normal(kx, (B, S), jnp.float32)
    wq = jax.random.uniform(kq, (S, S), jnp.float32, -bound, bound)
    wk = jax.random.uniform(kk, (S, S), jnp.float32, -bound, bound)
    wv = jax.random.uniform(kv, (S, S), jnp.float32, -bound, bound)
    bq = jax.random.uniform(kbq, (S,), jnp.float32, -bound, bound)
    bk = jax.random.uniform(kbk, (S,), jnp.float32, -bound, bound)
    bv = jax.random.uniform(kbv, (S,), jnp.float32, -bound, bound)

    # Compute the reference first (kernel output may alias x's HBM buffer).
    ref = attention_reference(x, wq, wk, wv, bq, bk, bv)

    # Fused params are built once at setup, not per forward call.
    w_fused, b_fused = fuse_attention_params(wq, wk, wv, bq, bk, bv)
    out = jax.block_until_ready(attention_forward(x, w_fused, b_fused))

    assert out.shape == (B, S)
    assert jnp.allclose(out, ref, atol=1e-4, rtol=1e-4), \
        float(jnp.max(jnp.abs(out - ref)))
    print("KERNEL_OK")
</pallas_src>

<mosaic_0001>
module attributes {stable_mosaic.version = 11 : i64} {
  func.func @attention_kernel(%arg0: i32, %arg1: memref<2x128xf32, #tpu.memory_space<vmem>>, %arg2: memref<128x384xf32, #tpu.memory_space<vmem>>, %arg3: memref<1x384xf32, #tpu.memory_space<vmem>>, %arg4: memref<2x128xf32, #tpu.memory_space<vmem>>) attributes {dimension_semantics = [#tpu.dimension_semantics<parallel>], iteration_bounds = array<i64: 1>, scalar_prefetch = 0 : i64, scratch_operands = 0 : i64, tpu.core_type = #tpu.core_type<tc>, window_params = [{transform_indices = @transform_0, window_bounds = array<i64: 2, 128>}, {pipeline_mode = #tpu.pipeline_mode<synchronous>, transform_indices = @transform_1, window_bounds = array<i64: 128, 384>}, {pipeline_mode = #tpu.pipeline_mode<synchronous>, transform_indices = @transform_2, window_bounds = array<i64: 1, 384>}, {transform_indices = @transform_3, window_bounds = array<i64: 2, 128>}]} {
    %c0 = arith.constant 0 : index
    %c0_0 = arith.constant 0 : index
    %0 = vector.load %arg1[%c0, %c0_0] : memref<2x128xf32, #tpu.memory_space<vmem>>, vector<2x128xf32>
    %c0_1 = arith.constant 0 : index
    %c0_2 = arith.constant 0 : index
    %1 = vector.load %arg2[%c0_1, %c0_2] : memref<128x384xf32, #tpu.memory_space<vmem>>, vector<128x384xf32>
    %cst = arith.constant dense<0.000000e+00> : vector<2x384xf32>
    %2 = tpu.matmul %0, %1, %cst {dimension_numbers = #tpu.dot_dimension_numbers<[1], [0], [0], [1], [0, 0, 1, 1], [], []>} : vector<2x128xf32>, vector<128x384xf32>, vector<2x384xf32> -> vector<2x384xf32>
    %c0_3 = arith.constant 0 : index
    %c0_4 = arith.constant 0 : index
    %3 = vector.load %arg3[%c0_3, %c0_4] : memref<1x384xf32, #tpu.memory_space<vmem>>, vector<1x384xf32>
    %4 = vector.broadcast %3 : vector<1x384xf32> to vector<2x384xf32>
    %5 = arith.addf %2, %4 : vector<2x384xf32>
    %6 = vector.extract_strided_slice %5 {offsets = [0, 256], sizes = [2, 128], strides = [1, 1]} : vector<2x384xf32> to vector<2x128xf32>
    %cst_5 = arith.constant dense<0xFF800000> : vector<2xf32>
    %7 = vector.multi_reduction <maximumf>, %6, %cst_5 [1] : vector<2x128xf32> to vector<2xf32>
    %8 = vector.shape_cast %7 : vector<2xf32> to vector<2x1xf32>
    %cst_6 = arith.constant dense<0x7F800000> : vector<2xf32>
    %9 = vector.multi_reduction <minimumf>, %6, %cst_6 [1] : vector<2x128xf32> to vector<2xf32>
    %10 = vector.shape_cast %9 : vector<2xf32> to vector<2x1xf32>
    %11 = vector.extract_strided_slice %5 {offsets = [0, 0], sizes = [1, 256], strides = [1, 1]} : vector<2x384xf32> to vector<1x256xf32>
    %12 = tpu.transpose %11, [1, 0] : vector<1x256xf32> -> vector<256x1xf32>
    %13 = vector.extract_strided_slice %12 {offsets = [0, 0], sizes = [128, 1], strides = [1, 1]} : vector<256x1xf32> to vector<128x1xf32>
    %14 = vector.extract_strided_slice %12 {offsets = [128, 0], sizes = [128, 1], strides = [1, 1]} : vector<256x1xf32> to vector<128x1xf32>
    %15 = vector.extract_strided_slice %6 {offsets = [0, 0], sizes = [1, 128], strides = [1, 1]} : vector<2x128xf32> to vector<1x128xf32>
    %cst_7 = arith.constant 0.000000e+00 : f32
    %16 = vector.broadcast %cst_7 : f32 to vector<128x1xf32>
    %17 = arith.cmpf oge, %13, %16 : vector<128x1xf32>
    %18 = vector.extract_strided_slice %8 {offsets = [0, 0], sizes = [1, 1], strides = [1, 1]} : vector<2x1xf32> to vector<1x1xf32>
    %19 = vector.broadcast %18 : vector<1x1xf32> to vector<128x1xf32>
    %20 = arith.mulf %13, %19 : vector<128x1xf32>
    %21 = vector.extract_strided_slice %10 {offsets = [0, 0], sizes = [1, 1], strides = [1, 1]} : vector<2x1xf32> to vector<1x1xf32>
    %22 = vector.broadcast %21 : vector<1x1xf32> to vector<128x1xf32>
    %23 = arith.mulf %13, %22 : vector<128x1xf32>
    %24 = arith.select %17, %20, %23 : vector<128x1xi1>, vector<128x1xf32>
    %25 = vector.shape_cast %15 : vector<1x128xf32> to vector<1x128xf32>
    %26 = vector.broadcast %25 : vector<1x128xf32> to vector<128x128xf32>
    %cst_8 = arith.constant 0.000000e+00 : f32
    %27 = vector.broadcast %cst_8 : f32 to vector<1x128xf32>
    %28 = vector.broadcast %13 : vector<128x1xf32> to vector<128x128xf32>
    %29 = arith.mulf %28, %26 : vector<128x128xf32>
    %30 = vector.broadcast %24 : vector<128x1xf32> to vector<128x128xf32>
    %31 = arith.subf %29, %30 : vector<128x128xf32>
    %32 = math.exp %31 : vector<128x128xf32>
    %cst_9 = arith.constant dense<0.000000e+00> : vector<128xf32>
    %33 = vector.multi_reduction <add>, %32, %cst_9 [1] : vector<128x128xf32> to vector<128xf32>
    %34 = vector.shape_cast %33 : vector<128xf32> to vector<128x1xf32>
    %35 = tpu.reciprocal %34 : vector<128x1xf32> -> vector<128x1xf32>
    %36 = arith.mulf %14, %35 : vector<128x1xf32>
    %37 = vector.broadcast %36 : vector<128x1xf32> to vector<128x128xf32>
    %38 = arith.mulf %37, %32 : vector<128x128xf32>
    %cst_10 = arith.constant dense<0.000000e+00> : vector<128xf32>
    %39 = vector.multi_reduction <add>, %38, %cst_10 [0] : vector<128x128xf32> to vector<128xf32>
    %40 = vector.shape_cast %39 : vector<128xf32> to vector<1x128xf32>
    %41 = arith.addf %27, %40 : vector<1x128xf32>
    %42 = vector.extract_strided_slice %5 {offsets = [1, 0], sizes = [1, 256], strides = [1, 1]} : vector<2x384xf32> to vector<1x256xf32>
    %43 = tpu.transpose %42, [1, 0] : vector<1x256xf32> -> vector<256x1xf32>
    %44 = vector.extract_strided_slice %43 {offsets = [0, 0], sizes = [128, 1], strides = [1, 1]} : vector<256x1xf32> to vector<128x1xf32>
    %45 = vector.extract_strided_slice %43 {offsets = [128, 0], sizes = [128, 1], strides = [1, 1]} : vector<256x1xf32> to vector<128x1xf32>
    %46 = vector.extract_strided_slice %6 {offsets = [1, 0], sizes = [1, 128], strides = [1, 1]} : vector<2x128xf32> to vector<1x128xf32>
    %cst_11 = arith.constant 0.000000e+00 : f32
    %47 = vector.broadcast %cst_11 : f32 to vector<128x1xf32>
    %48 = arith.cmpf oge, %44, %47 : vector<128x1xf32>
    %49 = vector.extract_strided_slice %8 {offsets = [1, 0], sizes = [1, 1], strides = [1, 1]} : vector<2x1xf32> to vector<1x1xf32>
    %50 = vector.broadcast %49 : vector<1x1xf32> to vector<128x1xf32>
    %51 = arith.mulf %44, %50 : vector<128x1xf32>
    %52 = vector.extract_strided_slice %10 {offsets = [1, 0], sizes = [1, 1], strides = [1, 1]} : vector<2x1xf32> to vector<1x1xf32>
    %53 = vector.broadcast %52 : vector<1x1xf32> to vector<128x1xf32>
    %54 = arith.mulf %44, %53 : vector<128x1xf32>
    %55 = arith.select %48, %51, %54 : vector<128x1xi1>, vector<128x1xf32>
    %56 = vector.shape_cast %46 : vector<1x128xf32> to vector<1x128xf32>
    %57 = vector.broadcast %56 : vector<1x128xf32> to vector<128x128xf32>
    %cst_12 = arith.constant 0.000000e+00 : f32
    %58 = vector.broadcast %cst_12 : f32 to vector<1x128xf32>
    %59 = vector.broadcast %44 : vector<128x1xf32> to vector<128x128xf32>
    %60 = arith.mulf %59, %57 : vector<128x128xf32>
    %61 = vector.broadcast %55 : vector<128x1xf32> to vector<128x128xf32>
    %62 = arith.subf %60, %61 : vector<128x128xf32>
    %63 = math.exp %62 : vector<128x128xf32>
    %cst_13 = arith.constant dense<0.000000e+00> : vector<128xf32>
    %64 = vector.multi_reduction <add>, %63, %cst_13 [1] : vector<128x128xf32> to vector<128xf32>
    %65 = vector.shape_cast %64 : vector<128xf32> to vector<128x1xf32>
    %66 = tpu.reciprocal %65 : vector<128x1xf32> -> vector<128x1xf32>
    %67 = arith.mulf %45, %66 : vector<128x1xf32>
    %68 = vector.broadcast %67 : vector<128x1xf32> to vector<128x128xf32>
    %69 = arith.mulf %68, %63 : vector<128x128xf32>
    %cst_14 = arith.constant dense<0.000000e+00> : vector<128xf32>
    %70 = vector.multi_reduction <add>, %69, %cst_14 [0] : vector<128x128xf32> to vector<128xf32>
    %71 = vector.shape_cast %70 : vector<128xf32> to vector<1x128xf32>
    %72 = arith.addf %58, %71 : vector<1x128xf32>
    %73 = tpu.concatenate %41, %72 in 0 : vector<1x128xf32>, vector<1x128xf32> -> vector<2x128xf32>
    %74 = arith.addf %73, %0 : vector<2x128xf32>
    %c0_15 = arith.constant 0 : index
    %c0_16 = arith.constant 0 : index
    %75 = vector.load %arg4[%c0_15, %c0_16] : memref<2x128xf32, #tpu.memory_space<vmem>>, vector<2x128xf32>
    tpu.vector_store %arg4[%c0_15, %c0_16], %74 {strides = array<i32>} : memref<2x128xf32, #tpu.memory_space<vmem>>, vector<2x128xf32>,
    return
  }
  func.func @transform_0(%arg0: i32) -> (i32, i32) {
    %c0_i32 = arith.constant 0 : i32
    %c0_i32_0 = arith.constant 0 : i32
    return %arg0, %c0_i32 : i32, i32
  }
  func.func @transform_1(%arg0: i32) -> (i32, i32) {
    %c0_i32 = arith.constant 0 : i32
    %c0_i32_0 = arith.constant 0 : i32
    %c0_i32_1 = arith.constant 0 : i32
    return %c0_i32, %c0_i32_0 : i32, i32
  }
  func.func @transform_2(%arg0: i32) -> (i32, i32) {
    %c0_i32 = arith.constant 0 : i32
    %c0_i32_0 = arith.constant 0 : i32
    %c0_i32_1 = arith.constant 0 : i32
    return %c0_i32, %c0_i32_0 : i32, i32
  }
  func.func @transform_3(%arg0: i32) -> (i32, i32) {
    %c0_i32 = arith.constant 0 : i32
    %c0_i32_0 = arith.constant 0 : i32
    return %arg0, %c0_i32 : i32, i32
  }
}

</mosaic_0001>

<bundles_post_ra>
// kernel: tpu_custom_call.1
= control target key start
LH: loop header
LB: loop body
LE: loop exit
PB: predicated region body
PF: predicated region fallthrough
CT: control target
= control target key end

     0   :  { %8 = vsyncpa [#allocation3], 0  ;;  %s2810_s0 = inlined_call_operand.hbm [shape: f32[2,128], index: 0, kind: input, shape index: {}, may-alias: {0,3}]   ;;  %s2811_s1 = inlined_call_operand.hbm [shape: f32[128,384], index: 1, kind: input, shape index: {}]   ;;  %s2812_s2 = inlined_call_operand.vmem [shape: f32[1,384], index: 2, kind: input, shape index: {}]   ;;  %s2813_s3 = inlined_call_operand.hbm [shape: f32[2,128], index: 3, kind: output, shape index: {}, may-alias: {0,3}]  }
   0x1   :  { %9 = vsyncpa [#allocation6], 0 }
   0x2   :  { %10 = vsyncpa [#allocation4], 0  ;;  %s16_s14 = sshll.u32 %s2810_s0, 4  ;;  %s1904_s15 = smov [#allocation2]   ;;  %s17_s14 = int_to_ptr.hbm [resolvable:$true] %s16_s14 }
   0x3   :  { %s18_s16 = sshll.u32 %s1904_s15, 4  ;;  %s26_s19 = sshll.u32 %s2811_s1, 4  ;;  %s19_s16 = int_to_ptr.vmem [resolvable:$true] %s18_s16  ;;  %s27_s19 = int_to_ptr.hbm [resolvable:$true] %s26_s19 }
   0x4   :  { %21 = dma.hbm_to_vmem [thread:$0]  %s17_s14, 32, %s19_s16, [#allocation3]  }
   0x5   :  { %s1905_s20 = smov [#allocation5]   ;;  %s1906_s22 = smov 384  }
   0x6   :  { %s28_s21 = sshll.u32 %s1905_s20, 4  ;;  %s1907_s23 = smov 24   ;;  %s29_s21 = int_to_ptr.vmem [resolvable:$true] %s28_s21 }
   0x7   :  { %34 = dma.hbm_to_vmem [thread:$0]  %s27_s19, 6144, %s29_s21, [#allocation6], %s1906_s22, %s1906_s22, %s1907_s23  }
   0x8   :  { %1898 = dma.done.wait [#allocation3], 32  }
   0x9   :  { %1899 = vsyncadd [#allocation3], 4294967264 }
   0xa   :  { %1900 = dma.done.wait [#allocation6], 6144  }
   0xb   :  { %1901 = vsyncadd [#allocation6], 4294961152  ;;  %v91_v0 = vld [vmem:[#allocation5 + $0x168] sm:$0xff]  ;;  %v93_v1 = vld [vmem:[#allocation5 + $0x178] sm:$0xff]  ;;  %vm162_vm0 = vcmask 1041408   ;;  %s1676_s27 = sshll.u32 %s2813_s3, 4  ;;  %s1677_s27 = int_to_ptr.hbm [resolvable:$true] %s1676_s27 }
   0xc   :  { %v88_v2 = vld [vmem:[#allocation5 + $0x150] sm:$0xff]  ;;  %102 = vmatpush.msra.mxu0 %v91_v0  ;;  %142 = vmatpush.msra.mxu2 %v93_v1  ;;  %v90_v3 = vld [vmem:[#allocation5 + $0x160] sm:$0xff]  ;;  %v85_v4 = vld [vmem:[#allocation5 + $0x138] sm:$0xff] }
   0xd   :  { %v87_v5 = vld [vmem:[#allocation5 + $0x148] sm:$0xff]  ;;  %v82_v6 = vld [vmem:[#allocation5 + $0x120] sm:$0xff]  ;;  %v84_v7 = vld [vmem:[#allocation5 + $0x130] sm:$0xff] }
   0xe   :  { %103 = vmatpush.msra.mxu0 %v88_v2  ;;  %143 = vmatpush.msra.mxu2 %v90_v3  ;;  %v79_v8 = vld [vmem:[#allocation5 + $0x108] sm:$0xff]  ;;  %v81_v9 = vld [vmem:[#allocation5 + $0x118] sm:$0xff]  ;;  %v76_v10 = vld [vmem:[#allocation5 + $0xf0] sm:$0xff] }
   0xf   :  { %v78_v11 = vld [vmem:[#allocation5 + $0x100] sm:$0xff]  ;;  %v73_v12 = vld [vmem:[#allocation5 + $0xd8] sm:$0xff]  ;;  %v75_v13 = vld [vmem:[#allocation5 + $0xe8] sm:$0xff] }
  0x10   :  { %104 = vmatpush.msra.mxu0 %v85_v4  ;;  %144 = vmatpush.msra.mxu2 %v87_v5  ;;  %v92_v14 = vld [vmem:[#allocation5 + $0x170] sm:$0xff]  ;;  %v89_v15 = vld [vmem:[#allocation5 + $0x158] sm:$0xff]  ;;  %v70_v16 = vld [vmem:[#allocation5 + $0xc0] sm:$0xff] }
  0x11   :  { %v72_v17 = vld [vmem:[#allocation5 + $0xd0] sm:$0xff]  ;;  %122 = vmatpush.msra.mxu1 %v92_v14  ;;  %v86_v18 = vld [vmem:[#allocation5 + $0x140] sm:$0xff]  ;;  %v67_v19 = vld [vmem:[#allocation5 + $0xa8] sm:$0xff] }
  0x12   :  { %105 = vmatpush.msra.mxu0 %v82_v6  ;;  %145 = vmatpush.msra.mxu2 %v84_v7  ;;  %v69_v20 = vld [vmem:[#allocation5 + $0xb8] sm:$0xff]  ;;  %v83_v21 = vld [vmem:[#allocation5 + $0x128] sm:$0xff]  ;;  %v64_v22 = vld [vmem:[#allocation5 + $0x90] sm:$0xff]  ;;  %v1908_v7 = vmov 0  }
  0x13   :  { %123 = vmatpush.msra.mxu1 %v89_v15  ;;  %v66_v23 = vld [vmem:[#allocation5 + $0xa0] sm:$0xff]  ;;  %v80_v24 = vld [vmem:[#allocation5 + $0x110] sm:$0xff]  ;;  %v61_v25 = vld [vmem:[#allocation5 + $0x78] sm:$0xff] }
  0x14   :  { %106 = vmatpush.msra.mxu0 %v79_v8  ;;  %146 = vmatpush.msra.mxu2 %v81_v9  ;;  %v63_v26 = vld [vmem:[#allocation5 + $0x88] sm:$0xff]  ;;  %v77_v27 = vld [vmem:[#allocation5 + $0xf8] sm:$0xff]  ;;  %v58_v28 = vld [vmem:[#allocation5 + $0x60] sm:$0xff] }
  0x15   :  { %124 = vmatpush.msra.mxu1 %v86_v18  ;;  %v60_v29 = vld [vmem:[#allocation5 + $0x70] sm:$0xff]  ;;  %v74_v30 = vld [vmem:[#allocation5 + $0xe0] sm:$0xff]  ;;  %v55_v31 = vld [vmem:[#allocation5 + $0x48] sm:$0xff] }
  0x16   :  { %107 = vmatpush.msra.mxu0 %v76_v10  ;;  %147 = vmatpush.msra.mxu2 %v78_v11  ;;  %v57_v32 = vld [vmem:[#allocation5 + $0x58] sm:$0xff]  ;;  %v71_v33 = vld [vmem:[#allocation5 + $0xc8] sm:$0xff]  ;;  %v52_v34 = vld [vmem:[#allocation5 + $0x30] sm:$0xff] }
  0x17   :  { %125 = vmatpush.msra.mxu1 %v83_v21  ;;  %v54_v35 = vld [vmem:[#allocation5 + $0x40] sm:$0xff]  ;;  %v68_v36 = vld [vmem:[#allocation5 + $0xb0] sm:$0xff]  ;;  %v49_v37 = vld [vmem:[#allocation5 + $0x18] sm:$0xff] }
  0x18   :  { %108 = vmatpush.msra.mxu0 %v73_v12  ;;  %148 = vmatpush.msra.mxu2 %v75_v13  ;;  %v51_v38 = vld [vmem:[#allocation5 + $0x28] sm:$0xff]  ;;  %v65_v39 = vld [vmem:[#allocation5 + $0x98] sm:$0xff]  ;;  %v46_v40 = vld [vmem:[#allocation5] sm:$0xff] }
  0x19   :  { %126 = vmatpush.msra.mxu1 %v80_v24  ;;  %v48_v41 = vld [vmem:[#allocation5 + $0x10] sm:$0xff]  ;;  %v45_v42 = vld [vmem:[#allocation2] sm:$0x3]  ;;  %v62_v43 = vld [vmem:[#allocation5 + $0x80] sm:$0xff] }
  0x1a   :  { %109 = vmatpush.msra.mxu0 %v70_v16  ;;  %149 = vmatpush.msra.mxu2 %v72_v17  ;;  %v59_v44 = vld [vmem:[#allocation5 + $0x68] sm:$0xff]  ;;  %v56_v45 = vld [vmem:[#allocation5 + $0x50] sm:$0xff]  ;;  %v53_v46 = vld [vmem:[#allocation5 + $0x38] sm:$0xff] }
  0x1b   :  { %127 = vmatpush.msra.mxu1 %v77_v27  ;;  %v50_v47 = vld [vmem:[#allocation5 + $0x20] sm:$0xff]  ;;  %v47_v48 = vld [vmem:[#allocation5 + $0x8] sm:$0xff]  ;;  %v94_v49 = vld [vmem:[%s2812_s2] sm:$0x7]  ;;  %s1909_s2 = smov [#allocation7]  }
  0x1c   :  { %110 = vmatpush.msra.mxu0 %v67_v19  ;;  %150 = vmatpush.msra.mxu2 %v69_v20  ;;  %v96_v50 = vperm.slane %v94_v49, 0  ;;  %v98_v54 = vperm.slane %v94_v49, 2  ;;  %v97_v59 = vperm.slane %v94_v49, 1  ;;  %s1674_s24 = sshll.u32 %s1909_s2, 4  ;;  %s1675_s24 = int_to_ptr.vmem [resolvable:$true] %s1674_s24 }
  0x1d   :  { %128 = vmatpush.msra.mxu1 %v74_v30 }
  0x1e   :  { %111 = vmatpush.msra.mxu0 %v64_v22  ;;  %151 = vmatpush.msra.mxu2 %v66_v23 }
  0x1f   :  { %129 = vmatpush.msra.mxu1 %v71_v33 }
  0x20   :  { %112 = vmatpush.msra.mxu0 %v61_v25  ;;  %152 = vmatpush.msra.mxu2 %v63_v26 }
  0x21   :  { %130 = vmatpush.msra.mxu1 %v68_v36 }
  0x22   :  { %113 = vmatpush.msra.mxu0 %v58_v28  ;;  %153 = vmatpush.msra.mxu2 %v60_v29 }
  0x23   :  { %131 = vmatpush.msra.mxu1 %v65_v39 }
  0x24   :  { %114 = vmatpush.msra.mxu0 %v55_v31  ;;  %154 = vmatpush.msra.mxu2 %v57_v32 }
  0x25   :  { %132 = vmatpush.msra.mxu1 %v62_v43 }
  0x26   :  { %115 = vmatpush.msra.mxu0 %v52_v34  ;;  %155 = vmatpush.msra.mxu2 %v54_v35 }
  0x27   :  { %133 = vmatpush.msra.mxu1 %v59_v44 }
  0x28   :  { %116 = vmatpush.msra.mxu0 %v49_v37  ;;  %156 = vmatpush.msra.mxu2 %v51_v38 }
  0x29   :  { %134 = vmatpush.msra.mxu1 %v56_v45 }
  0x2a   :  { %117 = vmatpush.msra.mxu0 %v46_v40  ;;  %157 = vmatpush.msra.mxu2 %v48_v41 }
  0x2b   :  { %118 = vmatmul.f32.vlgmr.msra.gmra.mxu0 %v45_v42  ;;  %158 = vmatmul.f32.vlgmr.msra.gmra.mxu2 %v45_v42 }
  0x2c   :  { %135 = vmatpush.msra.mxu1 %v53_v46 }
  0x2e   :  { %136 = vmatpush.msra.mxu1 %v50_v47 }
  0x30   :  { %137 = vmatpush.msra.mxu1 %v47_v48 }
  0x31   :  { %138 = vmatmul.f32.vlgmr.msra.gmra.mxu1 %v45_v42 }
  0xa8   :  { %v119_v51 = vpop.f32.mrf.mxu0 }
  0xa9   :  { %v120_v52 = vadd.f32 %v119_v51, %v96_v50 }
  0xab   :  { %169 = vxpose.xlu1.b32.start.end [1/1] (short) %v120_v52, 128  ;;  %v916_v53 = vrot.slane %v120_v52, 1 }
  0xad   :  { %920 = vxpose.xlu2.b32.start.end [1/1] (short) %v916_v53, 128 }
  0xae   :  { %v159_v55 = vpop.f32.mrf.mxu2  ;;  %v139_v60 = vpop.f32.mrf.mxu1 }
  0xaf   :  { %v1939_v56 = vadd.f32 %v159_v55, %v98_v54  ;;  %v140_v61 = vadd.f32 %v139_v60, %v97_v59 }
  0xb1   :  { %v163_v57 = vsel %vm162_vm0, %v1939_v56, -inf  ;;  %v166_v58 = vsel %vm162_vm0, %v1939_v56, inf  ;;  %v917_v62 = vrot.slane %v140_v61, 1 }
  0xb2   :  { %164 = vmax.xlane.f32.xlu0 %v163_v57 }
  0xba   :  { %167 = vmin.xlane.f32.xlu0 %v166_v58 }
  0xe3   :  { %952 = vxpose.xlu0.b32.start.end [1/1] (short) %v917_v62, 128 }
 0x10f   :  { %1695 = vset.pattern.permute.xlu2 %v1908_v7 }
 0x125   :  { %v1973_v15 = vpop.xlane.xlu0 %164 }
 0x126   :  { %v2036_v40 = vperm.slane %v1973_v15, 0 }
 0x12b   :  { %201 = vxpose.xlu1.b32.start.end [1/1] (short) %v140_v61, 128 }
 0x12d   :  { %v1980_v18 = vpop.xlane.xlu0 %167 }
 0x12e   :  { %v2039_v41 = vperm.slane %v1980_v18, 0 }
 0x146   :  { %v1943_v63 = vpop.trf.xlu2 }
 0x14a   :  { %1696 = vset.pattern.permute.xlu0 %v1908_v7 }
 0x14e   :  { %v1947_v1 = vpop.trf.xlu2 }
 0x14f   :  { %v1945_v0 = vpop.trf.xlu1 }
 0x150   :  { %v250_v52 = vmul.f32 %v2036_v40, %v1945_v0  ;;  %v267_v53 = vmul.f32 %v2039_v41, %v1945_v0  ;;  %vm233_vm3 = vcmp.ge.f32.partialorder %v1945_v0, 0.0 }
 0x152   :  { %v283_v57 = vsel %vm233_vm3, %v250_v52, %v267_v53 }
 0x156   :  { %v1951_v3 = vpop.trf.xlu2 }
 0x157   :  { %v1949_v2 = vpop.trf.xlu1  ;;  %vm986_vm3 = vcmp.ge.f32.partialorder %v1951_v3, 0.0 }
 0x158   :  { %v251_v44 = vmul.f32 %v2036_v40, %v1949_v2  ;;  %v268_v45 = vmul.f32 %v2039_v41, %v1949_v2  ;;  %vm234_vm1 = vcmp.ge.f32.partialorder %v1949_v2, 0.0 }
 0x15a   :  { %v284_v46 = vsel %vm234_vm1, %v251_v44, %v268_v45  ;;  %vm984_vm1 = vcmp.ge.f32.partialorder %v1943_v63, 0.0 }
 0x15e   :  { %v1957_v6 = vpop.trf.xlu2 }
 0x15f   :  { %v1953_v4 = vpop.trf.xlu1 }
 0x160   :  { %v252_v61 = vmul.f32 %v2036_v40, %v1953_v4  ;;  %v269_v62 = vmul.f32 %v2039_v41, %v1953_v4  ;;  %vm235_vm5 = vcmp.ge.f32.partialorder %v1953_v4, 0.0 }
 0x166   :  { %v1961_v9 = vpop.trf.xlu2 }
 0x167   :  { %v1955_v5 = vpop.trf.xlu1 }
 0x168   :  { %v253_v48 = vmul.f32 %v2036_v40, %v1955_v5  ;;  %v270_v49 = vmul.f32 %v2039_v41, %v1955_v5  ;;  %vm236_vm2 = vcmp.ge.f32.partialorder %v1955_v5, 0.0 }
 0x16a   :  { %v286_v54 = vsel %vm236_vm2, %v253_v48, %v270_v49  ;;  %vm985_vm2 = vcmp.ge.f32.partialorder %v1947_v1, 0.0 }
 0x16e   :  { %v1965_v11 = vpop.trf.xlu2 }
 0x16f   :  { %v1959_v8 = vpop.trf.xlu1 }
 0x170   :  { %v254_v45 = vmul.f32 %v2036_v40, %v1959_v8  ;;  %vm237_vm7 = vcmp.ge.f32.partialorder %v1959_v8, 0.0 }
 0x176   :  { %v1969_v13 = vpop.trf.xlu2 }
 0x177   :  { %v1963_v10 = vpop.trf.xlu1 }
 0x178   :  { %v255_v58 = vmul.f32 %v2036_v40, %v1963_v10  ;;  %v272_v59 = vmul.f32 %v2039_v41, %v1963_v10  ;;  %vm238_vm4 = vcmp.ge.f32.partialorder %v1963_v10, 0.0 }
 0x17e   :  { %1694 = vset.pattern.permute.xlu1 %v1908_v7  ;;  %v1978_v17 = vpop.trf.xlu2  ;;  %v285_v7 = vsel %vm235_vm5, %v252_v61, %v269_v62  ;;  %vm988_vm5 = vcmp.ge.f32.partialorder %v1961_v9, 0.0 }
 0x17f   :  { %v1967_v12 = vpop.trf.xlu1 }
 0x180   :  { %v273_v61 = vmul.f32 %v2039_v41, %v1967_v12  ;;  %vm239_vm10 = vcmp.ge.f32.partialorder %v1967_v12, 0.0 }
 0x186   :  { %v1985_v20 = vpop.trf.xlu2 }
 0x187   :  { %v1971_v14 = vpop.trf.xlu1  ;;  %v1987_v21 = vpop.trf.xlu0 }
 0x188   :  { %2822 = vst [vmem:[#allocation11_spill] sm:$0xff] %v1987_v21  ;;  %v274_v44 = vmul.f32 %v2039_v41, %v1971_v14  ;;  %vm240_vm6 = vcmp.ge.f32.partialorder %v1971_v14, 0.0 }
 0x18e   :  { %302 = vperm.xlu2 %1695, %v1945_v0   ;;  %v1992_v23 = vpop.trf.xlu2 }
 0x18f   :  { %v1976_v16 = vpop.trf.xlu1  ;;  %v1994_v24 = vpop.trf.xlu0 }
 0x190   :  { %2823 = vst [vmem:[#allocation12_spill] sm:$0xff] %v1994_v24  ;;  %vm241_vm12 = vcmp.ge.f32.partialorder %v1976_v16, 0.0 }
 0x196   :  { %307 = vperm.xlu2 %1695, %v1949_v2   ;;  %v1999_v26 = vpop.trf.xlu2  ;;  %v288_v2 = vsel %vm238_vm4, %v255_v58, %v272_v59  ;;  %v256_v59 = vmul.f32 %v2036_v40, %v1967_v12  ;;  %vm987_vm4 = vcmp.ge.f32.partialorder %v1957_v6, 0.0 }
 0x197   :  { %v1983_v19 = vpop.trf.xlu1  ;;  %v2004_v28 = vpop.trf.xlu0 }
 0x198   :  { %2824 = vst [vmem:[#allocation13_spill] sm:$0xff] %v2004_v28  ;;  %vm242_vm9 = vcmp.ge.f32.partialorder %v1983_v19, 0.0 }
 0x19e   :  { %317 = vperm.xlu2 %1695, %v1955_v5   ;;  %v2009_v30 = vpop.trf.xlu2 }
 0x19f   :  { %v1990_v22 = vpop.trf.xlu1  ;;  %v2011_v31 = vpop.trf.xlu0 }
 0x1a0   :  { %2825 = vst [vmem:[#allocation14_spill] sm:$0xff] %v2011_v31  ;;  %vm243_vm14 = vcmp.ge.f32.partialorder %v1990_v22, 0.0 }
 0x1a6   :  { %322 = vperm.xlu2 %1695, %v1959_v8   ;;  %v2016_v33 = vpop.trf.xlu2 }
 0x1a7   :  { %v1997_v25 = vpop.trf.xlu1  ;;  %v2018_v34 = vpop.trf.xlu0 }
 0x1a8   :  { %2826 = vst [vmem:[#allocation15_spill] sm:$0xff] %v2018_v34  ;;  %vm244_vm11 = vcmp.ge.f32.partialorder %v1997_v25, 0.0 }
 0x1ae   :  { %327 = vperm.xlu2 %1695, %v1963_v10   ;;  %v2024_v36 = vpop.trf.xlu2  ;;  %v257_v10 = vmul.f32 %v2036_v40, %v1971_v14 }
 0x1af   :  { %v2002_v27 = vpop.trf.xlu1  ;;  %v2026_v37 = vpop.trf.xlu0 }
 0x1b0   :  { %2827 = vst [vmem:[#allocation16_spill] sm:$0xff] %v2026_v37  ;;  %vm245_vm15 = vcmp.ge.f32.partialorder %v2002_v27, 0.0 }
 0x1b6   :  { %332 = vperm.xlu2 %1695, %v1967_v12   ;;  %v2032_v39 = vpop.trf.xlu2  ;;  %v258_v12 = vmul.f32 %v2036_v40, %v1976_v16 }
 0x1b7   :  { %v2007_v29 = vpop.trf.xlu1  ;;  %v2041_v42 = vpop.trf.xlu0 }
 0x1b8   :  { %2828 = vst [vmem:[#allocation17_spill] sm:$0xff] %v2041_v42  ;;  %vm246_vm8 = vcmp.ge.f32.partialorder %v2007_v29, 0.0 }
 0x1be   :  { %337 = vperm.xlu2 %1695, %v1971_v14   ;;  %v2051_v47 = vpop.trf.xlu2  ;;  %v263_v14 = vmul.f32 %v2036_v40, %v2007_v29 }
 0x1bf   :  { %v2014_v32 = vpop.trf.xlu1  ;;  %v2058_v50 = vpop.trf.xlu0 }
 0x1c0   :  { %2829 = vst [vmem:[#allocation18_spill] sm:$0xff] %v2058_v50  ;;  %vm247_vm13 = vcmp.ge.f32.partialorder %v2014_v32, 0.0 }
 0x1c6   :  { %347 = vperm.xlu2 %1695, %v1983_v19  }
 0x1c7   :  { %v2021_v35 = vpop.trf.xlu1  ;;  %v2075_v60 = vpop.trf.xlu0 }
 0x1c8   :  { %2830 = vst [vmem:[#allocation19_spill] sm:$0xff] %v2075_v60  ;;  %vm248_vm0 = vcmp.ge.f32.partialorder %v2021_v35, 0.0 }
 0x1c9   :  { %312 = vperm.xlu0 %1696, %v1953_v4   ;;  %v290_v4 = vsel %vm240_vm6, %v257_v10, %v274_v44  ;;  %v278_v44 = vmul.f32 %v2039_v41, %v1997_v25  ;;  %vm989_vm6 = vcmp.ge.f32.partialorder %v1965_v11, 0.0 }
 0x1ce   :  { %357 = vperm.xlu2 %1695, %v1997_v25  }
 0x1cf   :  { %v2029_v38 = vpop.trf.xlu1  ;;  %v2096_v48 = vpop.trf.xlu0 }
 0x1d0   :  { %2831 = vst [vmem:[#allocation20_spill] sm:$0xff] %v2096_v48 }
 0x1d1   :  { %342 = vperm.xlu0 %1696, %v1976_v16  }
 0x1d6   :  { %367 = vperm.xlu2 %1695, %v2007_v29  }
 0x1d7   :  { %v2043_v43 = vpop.trf.xlu1 }
 0x1d9   :  { %352 = vperm.xlu0 %1696, %v1990_v22  }
 0x1de   :  { %403 = vperm.xlu2 %1695, %v284_v46   ;;  %v271_v46 = vmul.f32 %v2039_v41, %v1959_v8  ;;  %v259_v8 = vmul.f32 %v2036_v40, %v1983_v19 }
 0x1df   :  { %v2061_v51 = vpop.trf.xlu1 }
 0x1e0   :  { %v287_v53 = vsel %vm237_vm7, %v254_v45, %v271_v46  ;;  %v275_v45 = vmul.f32 %v2039_v41, %v1976_v16  ;;  %v260_v16 = vmul.f32 %v2036_v40, %v1990_v22  ;;  %vm990_vm7 = vcmp.ge.f32.partialorder %v1969_v13, 0.0 }
 0x1e1   :  { %362 = vperm.xlu0 %1696, %v2002_v27  }
 0x1e6   :  { %413 = vperm.xlu2 %1695, %v286_v54   ;;  %v280_v54 = vmul.f32 %v2039_v41, %v2007_v29  ;;  %v2117_v29 = vpop.trf.xlu0 }
 0x1e7   :  { %v2081_v0 = vpop.trf.xlu1  ;;  %2832 = vst [vmem:[#allocation21_spill] sm:$0xff] %v2117_v29 }
 0x1e8   :  { %v2068_v55 = vpop.permute.xlu2 %302  ;;  %v296_v58 = vsel %vm246_vm8, %v263_v14, %v280_v54  ;;  %v264_v14 = vmul.f32 %v2036_v40, %v2014_v32  ;;  %vm991_vm8 = vcmp.ge.f32.partialorder %v1978_v17, 0.0 }
 0x1e9   :  { %398 = vperm.xlu0 %1696, %v283_v57   ;;  %v276_v57 = vmul.f32 %v2039_v41, %v1983_v19  ;;  %v261_v19 = vmul.f32 %v2036_v40, %v1997_v25  ;;  %v281_v25 = vmul.f32 %v2039_v41, %v2014_v32 }
 0x1eb   :  { %v292_v62 = vsel %vm242_vm9, %v259_v8, %v276_v57  ;;  %v294_v46 = vsel %vm244_vm11, %v261_v19, %v278_v44  ;;  %v277_v57 = vmul.f32 %v2039_v41, %v1990_v22  ;;  %v279_v19 = vmul.f32 %v2039_v41, %v2002_v27 }
 0x1ec   :  { %vm992_vm9 = vcmp.ge.f32.partialorder %v1985_v20, 0.0  ;;  %vm994_vm11 = vcmp.ge.f32.partialorder %v1999_v26, 0.0 }
 0x1ee   :  { %423 = vperm.xlu2 %1695, %v288_v2   ;;  %v2140_v54 = vpop.trf.xlu0 }
 0x1ef   :  { %v2098_v49 = vpop.trf.xlu1  ;;  %2833 = vst [vmem:[#allocation22_spill] sm:$0xff] %v2140_v54 }
 0x1f0   :  { %v2084_v5 = vpop.permute.xlu2 %307 }
 0x1f1   :  { %408 = vperm.xlu0 %1696, %v285_v7   ;;  %v289_v7 = vsel %vm239_vm10, %v256_v59, %v273_v61  ;;  %v293_v61 = vsel %vm243_vm14, %v260_v16, %v277_v57  ;;  %vm993_vm10 = vcmp.ge.f32.partialorder %v1992_v23, 0.0 }
 0x1f6   :  { %433 = vperm.xlu2 %1695, %v290_v4  }
 0x1f7   :  { %v2121_v10 = vpop.trf.xlu1 }
 0x1f8   :  { %v2100_v52 = vpop.permute.xlu2 %317 }
 0x1f9   :  { %418 = vperm.xlu0 %1696, %v287_v53   ;;  %v291_v53 = vsel %vm241_vm12, %v258_v12, %v275_v45  ;;  %vm995_vm12 = vcmp.ge.f32.partialorder %v2009_v30, 0.0 }
 0x1fd   :  { %463 = vperm.xlu1 %1694, %v296_v58   ;;  %v297_v58 = vsel %vm247_vm13, %v264_v14, %v281_v25  ;;  %v265_v14 = vmul.f32 %v2036_v40, %v2021_v35  ;;  %vm996_vm13 = vcmp.ge.f32.partialorder %v2016_v33, 0.0 }
 0x1fe   :  { %443 = vperm.xlu2 %1695, %v292_v62   ;;  %v2153_v62 = vpop.trf.xlu0 }
 0x1ff   :  { %v2143_v8 = vpop.trf.xlu1  ;;  %2834 = vst [vmem:[#allocation23_spill] sm:$0xff] %v2153_v62 }
 0x200   :  { %v2119_v2 = vpop.permute.xlu2 %322 }
 0x201   :  { %428 = vperm.xlu0 %1696, %v289_v7   ;;  %v262_v7 = vmul.f32 %v2036_v40, %v2002_v27  ;;  %v282_v27 = vmul.f32 %v2039_v41, %v2021_v35 }
 0x203   :  { %v295_v22 = vsel %vm245_vm15, %v262_v7, %v279_v19  ;;  %v298_v16 = vsel %vm248_vm0, %v265_v14, %v282_v27  ;;  %v2198_v7 = vperm.slane %v1939_v56, 0 }
 0x205   :  { %1053 = vperm.xlu1 %1694, %v1943_v63   ;;  %v383_v28 = vmul.f32 %v2100_v52, %v2198_v7 }
 0x206   :  { %453 = vperm.xlu2 %1695, %v294_v46   ;;  %v2167_v45 = vpop.trf.xlu0 }
 0x207   :  { %v2159_v44 = vpop.trf.xlu1  ;;  %2835 = vst [vmem:[#allocation24_spill] sm:$0xff] %v2167_v45 }
 0x208   :  { %v2134_v4 = vpop.permute.xlu2 %327 }
 0x209   :  { %438 = vperm.xlu0 %1696, %v291_v53   ;;  %v385_v52 = vmul.f32 %v2134_v4, %v2198_v7 }
 0x20d   :  { %1058 = vperm.xlu1 %1694, %v1947_v1  }
 0x20e   :  { %468 = vperm.xlu2 %1695, %v297_v58   ;;  %v2180_v25 = vpop.trf.xlu0 }
 0x20f   :  { %v2169_v46 = vpop.trf.xlu1  ;;  %2836 = vst [vmem:[#allocation25_spill] sm:$0xff] %v2180_v25 }
 0x210   :  { %v2151_v59 = vpop.permute.xlu2 %332 }
 0x211   :  { %448 = vperm.xlu0 %1696, %v293_v61  }
 0x215   :  { %1073 = vperm.xlu1 %1694, %v1961_v9  }
 0x216   :  { %377 = vperm.xlu2 %1695, %v2021_v35  }
 0x217   :  { %v2182_v57 = vpop.trf.xlu1 }
 0x218   :  { %v2164_v12 = vpop.permute.xlu2 %337 }
 0x219   :  { %458 = vperm.xlu0 %1696, %v295_v22   ;;  %v381_v22 = vmul.f32 %v2084_v5, %v2198_v7  ;;  %v380_v5 = vmul.f32 %v2068_v55, %v2198_v7 }
 0x21d   :  { %1078 = vperm.xlu1 %1694, %v1965_v11  }
 0x21f   :  { %v2189_v40 = vpop.trf.xlu1 }
 0x220   :  { %v2172_v53 = vpop.permute.xlu2 %347 }
 0x221   :  { %372 = vperm.xlu0 %1696, %v2014_v32   ;;  %v2187_v32 = vpop.trf.xlu0 }
 0x222   :  { %2837 = vst [vmem:[#allocation26_spill] sm:$0xff] %v2187_v32 }
 0x225   :  { %1083 = vperm.xlu1 %1694, %v1969_v13  }
 0x227   :  { %v2194_v35 = vpop.trf.xlu1 }
 0x228   :  { %v2184_v58 = vpop.permute.xlu2 %357 }
 0x229   :  { %473 = vperm.xlu0 %1696, %v298_v16  }
 0x22d   :  { %1088 = vperm.xlu1 %1694, %v1978_v17  }
 0x22f   :  { %v2205_v16 = vpop.trf.xlu1 }
 0x230   :  { %v2192_v41 = vpop.permute.xlu2 %367 }
 0x235   :  { %1093 = vperm.xlu1 %1694, %v1985_v20  }
 0x237   :  { %v2210_v48 = vpop.trf.xlu1 }
 0x238   :  { %v404_v19 = vpop.permute.xlu2 %403 }
 0x239   :  { %v477_v27 = vsub.f32 %v381_v22, %v404_v19 }
 0x23b   :  { %v313_v61 = vpop.permute.xlu0 %312  ;;  %v494_v32 = vmul.f32 1.442695, %v477_v27 }
 0x23c   :  { %v382_v54 = vmul.f32 %v313_v61, %v2198_v7 }
 0x23d   :  { %1098 = vperm.xlu1 %1694, %v1992_v23   ;;  %1697 = vpow2.f32 %v494_v32 }
 0x23f   :  { %v2220_v19 = vpop.trf.xlu1 }
 0x240   :  { %v414_v22 = vpop.permute.xlu2 %413 }
 0x243   :  { %v2202_v14 = vpop.permute.xlu0 %342  ;;  %v2212_v42 = vpop.eup %1697 }
 0x245   :  { %1103 = vperm.xlu1 %1694, %v1999_v26  }
 0x247   :  { %v2227_v55 = vpop.trf.xlu1 }
 0x248   :  { %v424_v45 = vpop.permute.xlu2 %423 }
 0x24b   :  { %v2207_v62 = vpop.permute.xlu0 %352 }
 0x24d   :  { %1108 = vperm.xlu1 %1694, %v2009_v30  }
 0x253   :  { %v2214_v31 = vpop.permute.xlu0 %362  ;;  %526 = vadd.xlane.f32.xlu0 %v2212_v42 }
 0x255   :  { %1113 = vperm.xlu1 %1694, %v2016_v33  }
 0x25b   :  { %v399_v27 = vpop.permute.xlu0 %398 }
 0x25c   :  { %v476_v32 = vsub.f32 %v380_v5, %v399_v27  ;;  %v479_v5 = vsub.f32 %v383_v28, %v414_v22  ;;  %v2243_v28 = vperm.slane %v1980_v18, 1 }
 0x25d   :  { %1118 = vperm.xlu1 %1694, %v2024_v36  }
 0x25e   :  { %v492_v25 = vmul.f32 1.442695, %v476_v32  ;;  %v498_v61 = vmul.f32 1.442695, %v479_v5  ;;  %v2240_v32 = vperm.slane %v1973_v15, 1  ;;  %v1018_v5 = vmul.f32 %v2243_v28, %v1943_v63 }
 0x25f   :  { %v386_v15 = vmul.f32 %v2151_v59, %v2198_v7  ;;  %v1019_v59 = vmul.f32 %v2243_v28, %v1947_v1 }
 0x260   :  { %1699 = vpow2.f32 %v492_v25  ;;  %v384_v25 = vmul.f32 %v2119_v2, %v2198_v7  ;;  %v434_v2 = vpop.permute.xlu2 %433  ;;  %v1001_v4 = vmul.f32 %v2240_v32, %v1943_v63  ;;  %v1002_v63 = vmul.f32 %v2240_v32, %v1947_v1 }
 0x261   :  { %v1003_v1 = vmul.f32 %v2240_v32, %v1951_v3 }
 0x263   :  { %v409_v60 = vpop.permute.xlu0 %408 }
 0x264   :  { %v478_v37 = vsub.f32 %v382_v54, %v409_v60 }
 0x265   :  { %1123 = vperm.xlu1 %1694, %v2032_v39  }
 0x266   :  { %v2229_v29 = vpop.eup %1699  ;;  %v496_v50 = vmul.f32 1.442695, %v478_v37 }
 0x267   :  { %524 = vadd.xlane.f32.xlu2 %v2229_v29 }
 0x268   :  { %1701 = vpow2.f32 %v496_v50  ;;  %v481_v50 = vsub.f32 %v385_v52, %v424_v45 }
 0x269   :  { %1703 = vpow2.f32 %v498_v61  ;;  %v1034_v61 = vsel %vm984_vm1, %v1001_v4, %v1018_v5 }
 0x26a   :  { %v502_v18 = vmul.f32 1.442695, %v481_v50  ;;  %v388_v50 = vmul.f32 %v2202_v14, %v2198_v7 }
 0x26b   :  { %v419_v60 = vpop.permute.xlu0 %418 }
 0x26c   :  { %v480_v54 = vsub.f32 %v384_v25, %v419_v60 }
 0x26d   :  { %1128 = vperm.xlu1 %1694, %v2051_v47  }
 0x26e   :  { %v2237_v27 = vpop.eup %1701  ;;  %v500_v37 = vmul.f32 1.442695, %v480_v54  ;;  %v387_v54 = vmul.f32 %v2164_v12, %v2198_v7  ;;  %v444_v12 = vpop.permute.xlu2 %443 }
 0x26f   :  { %v2245_v22 = vpop.permute.xlu1 %463  ;;  %528 = vadd.xlane.f32.xlu2 %v2237_v27  ;;  %v2255_v60 = vpop.eup %1703 }
 0x270   :  { %1705 = vpow2.f32 %v500_v37  ;;  %v483_v34 = vsub.f32 %v387_v54, %v434_v2 }
 0x271   :  { %1707 = vpow2.f32 %v502_v18 }
 0x272   :  { %v506_v2 = vmul.f32 1.442695, %v483_v34  ;;  %v1020_v34 = vmul.f32 %v2243_v28, %v1951_v3 }
 0x273   :  { %v429_v25 = vpop.permute.xlu0 %428 }
 0x274   :  { %v482_v45 = vsub.f32 %v386_v15, %v429_v25  ;;  %v1035_v15 = vsel %vm985_vm2, %v1002_v63, %v1019_v59  ;;  %v389_v25 = vmul.f32 %v2172_v53, %v2198_v7  ;;  %v390_v53 = vmul.f32 %v2207_v62, %v2198_v7 }
 0x275   :  { %1149 = vperm.xlu1 %1694, %v1034_v61   ;;  %v1004_v62 = vmul.f32 %v2240_v32, %v1957_v6  ;;  %vm997_vm2 = vcmp.ge.f32.partialorder %v2024_v36, 0.0 }
 0x276   :  { %v2259_v52 = vpop.eup %1705  ;;  %v504_v37 = vmul.f32 1.442695, %v482_v45  ;;  %v485_v54 = vsub.f32 %v389_v25, %v444_v12  ;;  %v454_v63 = vpop.permute.xlu2 %453 }
 0x277   :  { %v2261_v21 = vpop.permute.xlu1 %1053  ;;  %532 = vadd.xlane.f32.xlu0 %v2259_v52  ;;  %530 = vadd.xlane.f32.xlu2 %v2255_v60  ;;  %v2272_v18 = vpop.eup %1707 }
 0x278   :  { %1709 = vpow2.f32 %v504_v37  ;;  %v510_v14 = vmul.f32 1.442695, %v485_v54  ;;  %v1021_v54 = vmul.f32 %v2243_v28, %v1957_v6 }
 0x279   :  { %1711 = vpow2.f32 %v506_v2 }
 0x27b   :  { %v439_v4 = vpop.permute.xlu0 %438 }
 0x27c   :  { %v484_v5 = vsub.f32 %v388_v50, %v439_v4  ;;  %v1036_v50 = vsel %vm986_vm3, %v1003_v1, %v1020_v34  ;;  %v391_v4 = vmul.f32 %v2184_v58, %v2198_v7  ;;  %v392_v58 = vmul.f32 %v2214_v31, %v2198_v7 }
 0x27d   :  { %1154 = vperm.xlu1 %1694, %v1035_v15   ;;  %vm998_vm3 = vcmp.ge.f32.partialorder %v2032_v39, 0.0 }
 0x27e   :  { %v2276_v45 = vpop.eup %1709  ;;  %v508_v61 = vmul.f32 1.442695, %v484_v5  ;;  %v487_v25 = vsub.f32 %v391_v4, %v454_v63 }
 0x27f   :  { %v2278_v37 = vpop.permute.xlu1 %1058  ;;  %536 = vadd.xlane.f32.xlu0 %v2276_v45  ;;  %534 = vadd.xlane.f32.xlu2 %v2272_v18  ;;  %v2289_v2 = vpop.eup %1711 }
 0x280   :  { %1713 = vpow2.f32 %v508_v61  ;;  %v514_v1 = vmul.f32 1.442695, %v487_v25  ;;  %v1005_v25 = vmul.f32 %v2240_v32, %v1961_v9 }
 0x281   :  { %1715 = vpow2.f32 %v510_v14  ;;  %v1037_v14 = vsel %vm987_vm4, %v1004_v62, %v1021_v54  ;;  %v1022_v62 = vmul.f32 %v2243_v28, %v1961_v9 }
 0x283   :  { %v449_v59 = vpop.permute.xlu0 %448 }
 0x284   :  { %v486_v12 = vsub.f32 %v390_v53, %v449_v59  ;;  %v469_v59 = vpop.permute.xlu2 %468 }
 0x285   :  { %1159 = vperm.xlu1 %1694, %v1036_v50   ;;  %v393_v50 = vmul.f32 %v2192_v41, %v2198_v7 }
 0x286   :  { %v2293_v5 = vpop.eup %1713  ;;  %v512_v15 = vmul.f32 1.442695, %v486_v12 }
 0x287   :  { %2838 = vst [vmem:[#allocation27_spill] sm:$0xff] %v2293_v5  ;;  %v2295_v61 = vpop.permute.xlu1 %1073  ;;  %540 = vadd.xlane.f32.xlu0 %v2293_v5  ;;  %538 = vadd.xlane.f32.xlu2 %v2289_v2  ;;  %v2306_v63 = vpop.eup %1715  ;;  %v489_v31 = vsub.f32 %v393_v50, %v2245_v22 }
 0x288   :  { %1717 = vpow2.f32 %v512_v15  ;;  %2839 = vst [vmem:[#allocation28_spill] sm:$0xff] %v2306_v63 }
 0x289   :  { %1719 = vpow2.f32 %v514_v1  ;;  %v518_v54 = vmul.f32 1.442695, %v489_v31  ;;  %v1038_v1 = vsel %vm988_vm5, %v1005_v25, %v1022_v62  ;;  %v1023_v31 = vmul.f32 %v2243_v28, %v1965_v11 }
 0x28b   :  { %v459_v34 = vpop.permute.xlu0 %458 }
 0x28c   :  { %v488_v53 = vsub.f32 %v392_v58, %v459_v34 }
 0x28d   :  { %1164 = vperm.xlu1 %1694, %v1037_v14   ;;  %v378_v14 = vpop.permute.xlu2 %377 }
 0x28e   :  { %v2308_v12 = vpop.eup %1717  ;;  %v516_v4 = vmul.f32 1.442695, %v488_v53  ;;  %v395_v25 = vmul.f32 %v378_v14, %v2198_v7 }
 0x28f   :  { %2840 = vst [vmem:[#allocation29_spill] sm:$0xff] %v2308_v12  ;;  %v2312_v15 = vpop.permute.xlu1 %1078  ;;  %544 = vadd.xlane.f32.xlu0 %v2308_v12  ;;  %542 = vadd.xlane.f32.xlu2 %v2306_v63  ;;  %v2323_v34 = vpop.eup %1719 }
 0x290   :  { %1721 = vpow2.f32 %v516_v4  ;;  %2841 = vst [vmem:[#allocation30_spill] sm:$0xff] %v2323_v34  ;;  %v1006_v4 = vmul.f32 %v2240_v32, %v1965_v11  ;;  %v1007_v11 = vmul.f32 %v2240_v32, %v1969_v13 }
 0x291   :  { %1723 = vpow2.f32 %v518_v54 }
 0x293   :  { %v373_v41 = vpop.permute.xlu0 %372 }
 0x294   :  { %v394_v58 = vmul.f32 %v373_v41, %v2198_v7  ;;  %v1039_v41 = vsel %vm989_vm6, %v1006_v4, %v1023_v31  ;;  %v1024_v7 = vmul.f32 %v2243_v28, %v1969_v13  ;;  %v1008_v31 = vmul.f32 %v2240_v32, %v1978_v17 }
 0x295   :  { %1169 = vperm.xlu1 %1694, %v1038_v1   ;;  %v1009_v13 = vmul.f32 %v2240_v32, %v1985_v20  ;;  %vm999_vm6 = vcmp.ge.f32.partialorder %v2051_v47, 0.0 }
 0x296   :  { %v2325_v53 = vpop.eup %1721  ;;  %v490_v22 = vsub.f32 %v394_v58, %v469_v59  ;;  %v1040_v14 = vsel %vm990_vm7, %v1007_v11, %v1024_v7  ;;  %v1010_v7 = vmul.f32 %v2240_v32, %v1992_v23 }
 0x297   :  { %2842 = vst [vmem:[#allocation31_spill] sm:$0xff] %v2325_v53  ;;  %v2327_v50 = vpop.permute.xlu1 %1083  ;;  %548 = vadd.xlane.f32.xlu0 %v2325_v53  ;;  %546 = vadd.xlane.f32.xlu2 %v2323_v34  ;;  %v2337_v58 = vpop.eup %1723  ;;  %v1014_v53 = vmul.f32 %v2240_v32, %v2024_v36 }
 0x298   :  { %v520_v9 = vmul.f32 1.442695, %v490_v22  ;;  %2843 = vst [vmem:[#allocation32_spill] sm:$0xff] %v2337_v58 }
 0x29a   :  { %1725 = vpow2.f32 %v520_v9 }
 0x29b   :  { %v474_v59 = vpop.permute.xlu0 %473 }
 0x29c   :  { %v491_v62 = vsub.f32 %v395_v25, %v474_v59  ;;  %v1025_v25 = vmul.f32 %v2243_v28, %v1978_v17  ;;  %v1027_v17 = vmul.f32 %v2243_v28, %v1992_v23  ;;  %v1012_v23 = vmul.f32 %v2240_v32, %v2009_v30 }
 0x29d   :  { %1174 = vperm.xlu1 %1694, %v1039_v41   ;;  %v1026_v41 = vmul.f32 %v2243_v28, %v1985_v20  ;;  %v1028_v20 = vmul.f32 %v2243_v28, %v1999_v26 }
 0x29e   :  { %v522_v1 = vmul.f32 1.442695, %v491_v62  ;;  %v1041_v59 = vsel %vm991_vm8, %v1008_v31, %v1025_v25  ;;  %v1011_v25 = vmul.f32 %v2240_v32, %v1999_v26 }
 0x29f   :  { %v2339_v54 = vpop.permute.xlu1 %1088  ;;  %550 = vadd.xlane.f32.xlu2 %v2337_v58 }
 0x2a0   :  { %v2342_v22 = vpop.eup %1725  ;;  %1727 = vpow2.f32 %v522_v1  ;;  %v1042_v1 = vsel %vm992_vm9, %v1009_v13, %v1026_v41 }
 0x2a1   :  { %2844 = vst [vmem:[#allocation33_spill] sm:$0xff] %v2342_v22  ;;  %552 = vadd.xlane.f32.xlu0 %v2342_v22 }
 0x2a5   :  { %1179 = vperm.xlu1 %1694, %v1040_v14   ;;  %v1043_v14 = vsel %vm993_vm10, %v1010_v7, %v1027_v17 }
 0x2a6   :  { %v2350_v9 = vpop.eup %1727 }
 0x2a7   :  { %2845 = vst [vmem:[#allocation34_spill] sm:$0xff] %v2350_v9  ;;  %v2352_v4 = vpop.permute.xlu1 %1093  ;;  %554 = vadd.xlane.f32.xlu2 %v2350_v9 }
 0x2ad   :  { %1184 = vperm.xlu1 %1694, %v1041_v59   ;;  %v1044_v59 = vsel %vm994_vm11, %v1011_v25, %v1028_v20  ;;  %v1013_v25 = vmul.f32 %v2240_v32, %v2016_v33  ;;  %v1030_v20 = vmul.f32 %v2243_v28, %v2016_v33  ;;  %v1031_v33 = vmul.f32 %v2243_v28, %v2024_v36 }
 0x2ae   :  { %v2411_v36 = vperm.slane %v1939_v56, 1  ;;  %v1033_v56 = vmul.f32 %v2243_v28, %v2051_v47 }
 0x2af   :  { %v2360_v62 = vpop.permute.xlu1 %1098 }
 0x2b5   :  { %1189 = vperm.xlu1 %1694, %v1042_v1   ;;  %v1029_v1 = vmul.f32 %v2243_v28, %v2009_v30  ;;  %v1046_v30 = vsel %vm996_vm13, %v1013_v25, %v1030_v20  ;;  %v1032_v25 = vmul.f32 %v2243_v28, %v2032_v39 }
 0x2b7   :  { %v2367_v11 = vpop.permute.xlu1 %1103  ;;  %v1045_v7 = vsel %vm995_vm12, %v1012_v23, %v1029_v1 }
 0x2bd   :  { %1194 = vperm.xlu1 %1694, %v1043_v14  }
 0x2bf   :  { %v2374_v31 = vpop.permute.xlu1 %1108 }
 0x2c5   :  { %1199 = vperm.xlu1 %1694, %v1044_v59  }
 0x2c6   :  { %v527_v13 = vpop.xlane.xlu0 %526 }
 0x2c7   :  { %1729 = vrcp.f32 %v527_v13  ;;  %v2381_v41 = vpop.permute.xlu1 %1113  ;;  %v581_v59 = vand.u32 2147483648, %v527_v13  ;;  %v579_v24 = vand.u32 2147483647, %v527_v13  ;;  %vm575_vm15 = vweird.f32 %v527_v13 }
 0x2c9   :  { %v582_v1 = vor.u32 1.1754944e-38, %v581_v59  ;;  %vm580_vm1 = vcmp.eq.f32.partialorder %v579_v24, 8.507059e+37  ;;  %v1015_v24 = vmul.f32 %v2240_v32, %v2032_v39 }
 0x2cd   :  { %v1730_v17 = vpop.eup %1729  ;;  %1204 = vperm.xlu1 %1694, %v1045_v7  }
 0x2ce   :  { %v571_v14 = vmul.f32 %v1730_v17, %v527_v13  ;;  %vm576_vm14 = vweird.f32 %v1730_v17  ;;  %v1047_v13 = vsel %vm997_vm2, %v1014_v53, %v1031_v33  ;;  %v1048_v53 = vsel %vm998_vm3, %v1015_v24, %v1032_v25 }
 0x2cf   :  { %v2388_v9 = vpop.permute.xlu1 %1118  ;;  %vm577_vm0 = vmor %vm575_vm15, %vm576_vm14 }
 0x2d0   :  { %v572_v26 = vsub.f32 1.0, %v571_v14 }
 0x2d2   :  { %v573_v22 = vmul.f32 %v1730_v17, %v572_v26 }
 0x2d4   :  { %v574_v23 = vadd.f32 %v1730_v17, %v573_v22 }
 0x2d5   :  { %1209 = vperm.xlu1 %1694, %v1046_v30   ;;  %v2415_v30 = vmul.f32 %v2261_v21, %v2411_v36 }
 0x2d6   :  { %v578_v7 = vsel %vm577_vm0, %v1730_v17, %v574_v23 }
 0x2d7   :  { %v2395_v14 = vpop.permute.xlu1 %1123  ;;  %v583_v58 = vsel %vm580_vm1, %v582_v1, %v578_v7  ;;  %v1016_v7 = vmul.f32 %v2240_v32, %v2051_v47 }
 0x2d8   :  { %2846 = vst [vmem:[#allocation35_spill] sm:$0xff] %v2395_v14  ;;  %v781_v26 = vmul.f32 %v583_v58, %v2043_v43 }
 0x2da   :  { %803 = vperm.xlu2 %1695, %v781_v26   ;;  %v525_v22 = vpop.xlane.xlu2 %524 }
 0x2db   :  { %1731 = vrcp.f32 %v525_v22  ;;  %v567_v1 = vand.u32 2147483648, %v525_v22  ;;  %v565_v33 = vand.u32 2147483647, %v525_v22  ;;  %vm561_vm5 = vweird.f32 %v525_v22 }
 0x2dd   :  { %1214 = vperm.xlu1 %1694, %v1047_v13   ;;  %v568_v21 = vor.u32 1.1754944e-38, %v567_v1  ;;  %vm566_vm8 = vcmp.eq.f32.partialorder %v565_v33, 8.507059e+37 }
 0x2df   :  { %v2403_v17 = vpop.permute.xlu1 %1128 }
 0x2e0   :  { %2847 = vst [vmem:[#allocation36_spill] sm:$0xff] %v2403_v17 }
 0x2e1   :  { %v1732_v20 = vpop.eup %1731 }
 0x2e2   :  { %v557_v59 = vmul.f32 %v1732_v20, %v525_v22  ;;  %v529_v43 = vpop.xlane.xlu2 %528  ;;  %vm562_vm4 = vweird.f32 %v1732_v20  ;;  %v1049_v22 = vsel %vm999_vm6, %v1016_v7, %v1033_v56 }
 0x2e3   :  { %1733 = vrcp.f32 %v529_v43  ;;  %vm563_vm7 = vmor %vm561_vm5, %vm562_vm4  ;;  %v595_v1 = vand.u32 2147483648, %v529_v43  ;;  %vm589_vm10 = vweird.f32 %v529_v43 }
 0x2e4   :  { %v558_v58 = vsub.f32 1.0, %v557_v59 }
 0x2e5   :  { %1219 = vperm.xlu1 %1694, %v1048_v53  }
 0x2e6   :  { %v559_v23 = vmul.f32 %v1732_v20, %v558_v58 }
 0x2e7   :  { %v2419_v39 = vpop.permute.xlu1 %1149 }
 0x2e8   :  { %v560_v13 = vadd.f32 %v1732_v20, %v559_v23 }
 0x2e9   :  { %v1734_v24 = vpop.eup %1733 }
 0x2ea   :  { %v585_v25 = vmul.f32 %v1734_v24, %v529_v43  ;;  %v2426_v59 = vpop.xlane.xlu0 %532  ;;  %v2428_v32 = vpop.xlane.xlu2 %530  ;;  %v564_v58 = vsel %vm563_vm7, %v1732_v20, %v560_v13  ;;  %vm590_vm9 = vweird.f32 %v1734_v24  ;;  %v593_v20 = vand.u32 2147483647, %v529_v43 }
 0x2eb   :  { %1735 = vrcp.f32 %v2426_v59  ;;  %v569_v53 = vsel %vm566_vm8, %v568_v21, %v564_v58  ;;  %vm591_vm11 = vmor %vm589_vm10, %vm590_vm9  ;;  %vm617_vm14 = vweird.f32 %v2426_v59  ;;  %vm603_vm1 = vweird.f32 %v2428_v32 }
 0x2ec   :  { %v586_v28 = vsub.f32 1.0, %v585_v25  ;;  %1737 = vrcp.f32 %v2428_v32  ;;  %v780_v23 = vmul.f32 %v569_v53, %v2029_v38  ;;  %v596_v38 = vor.u32 1.1754944e-38, %v595_v1 }
 0x2ed   :  { %1224 = vperm.xlu1 %1694, %v1049_v22   ;;  %vm594_vm12 = vcmp.eq.f32.partialorder %v593_v20, 8.507059e+37  ;;  %v621_v20 = vand.u32 2147483647, %v2426_v59 }
 0x2ee   :  { %v587_v47 = vmul.f32 %v1734_v24, %v586_v28  ;;  %798 = vperm.xlu0 %1696, %v780_v23  }
 0x2ef   :  { %v2433_v26 = vpop.permute.xlu1 %1154  ;;  %vm622_vm2 = vcmp.eq.f32.partialorder %v621_v20, 8.507059e+37 }
 0x2f0   :  { %v588_v17 = vadd.f32 %v1734_v24, %v587_v47  ;;  %v623_v47 = vand.u32 2147483648, %v2426_v59 }
 0x2f1   :  { %v1736_v13 = vpop.eup %1735 }
 0x2f2   :  { %v613_v33 = vmul.f32 %v1736_v13, %v2426_v59  ;;  %v2436_v7 = vpop.xlane.xlu0 %536  ;;  %v2438_v56 = vpop.xlane.xlu2 %534  ;;  %v592_v21 = vsel %vm591_vm11, %v1734_v24, %v588_v17  ;;  %vm618_vm13 = vweird.f32 %v1736_v13  ;;  %v609_v17 = vand.u32 2147483648, %v2428_v32 }
 0x2f3   :  { %v1738_v25 = vpop.eup %1737  ;;  %1739 = vrcp.f32 %v2436_v7  ;;  %v597_v43 = vsel %vm594_vm12, %v596_v38, %v592_v21  ;;  %vm2450_vm15 = vmor %vm617_vm14, %vm618_vm13  ;;  %v1132_v38 = vmul.f32 %v2278_v37, %v2411_v36  ;;  %vm645_vm6 = vweird.f32 %v2436_v7 }
 0x2f4   :  { %v614_v58 = vsub.f32 1.0, %v613_v33  ;;  %v599_v28 = vmul.f32 %v1738_v25, %v2428_v32  ;;  %1741 = vrcp.f32 %v2438_v56  ;;  %v782_v23 = vmul.f32 %v597_v43, %v2061_v51 }
 0x2f5   :  { %vm604_vm0 = vweird.f32 %v1738_v25  ;;  %v607_v51 = vand.u32 2147483647, %v2428_v32  ;;  %v610_v34 = vor.u32 1.1754944e-38, %v609_v17  ;;  %v1228_v63 = vsub.f32 %v1132_v38, %v2433_v26 }
 0x2f6   :  { %v615_v22 = vmul.f32 %v1736_v13, %v614_v58  ;;  %v600_v53 = vsub.f32 1.0, %v599_v28  ;;  %808 = vperm.xlu0 %1696, %v782_v23   ;;  %v624_v23 = vor.u32 1.1754944e-38, %v623_v47  ;;  %vm605_vm3 = vmor %vm603_vm1, %vm604_vm0  ;;  %v651_v17 = vand.u32 2147483648, %v2436_v7 }
 0x2f7   :  { %v2446_v24 = vpop.permute.xlu1 %1159  ;;  %vm608_vm4 = vcmp.eq.f32.partialorder %v607_v51, 8.507059e+37  ;;  %v635_v38 = vand.u32 2147483647, %v2438_v56  ;;  %vm631_vm9 = vweird.f32 %v2438_v56 }
 0x2f8   :  { %v601_v1 = vmul.f32 %v1738_v25, %v600_v53  ;;  %v616_v33 = vadd.f32 %v1736_v13, %v615_v22 }
 0x2f9   :  { %v1740_v14 = vpop.eup %1739  ;;  %vm636_vm12 = vcmp.eq.f32.partialorder %v635_v38, 8.507059e+37 }
 0x2fa   :  { %v641_v58 = vmul.f32 %v1740_v14, %v2436_v7  ;;  %v2458_v28 = vpop.xlane.xlu0 %540  ;;  %v2460_v43 = vpop.xlane.xlu2 %538  ;;  %v620_v59 = vsel %vm2450_vm15, %v1736_v13, %v616_v33  ;;  %v602_v22 = vadd.f32 %v1738_v25, %v601_v1  ;;  %vm646_vm5 = vweird.f32 %v1740_v14 }
 0x2fb   :  { %v1742_v53 = vpop.eup %1741  ;;  %1743 = vrcp.f32 %v2458_v28  ;;  %v625_v21 = vsel %vm622_vm2, %v624_v23, %v620_v59  ;;  %v637_v33 = vand.u32 2147483648, %v2438_v56  ;;  %vm2480_vm7 = vmor %vm645_vm6, %vm646_vm5  ;;  %v663_v38 = vand.u32 2147483647, %v2460_v43 }
 0x2fc   :  { %v642_v12 = vsub.f32 1.0, %v641_v58  ;;  %v627_v37 = vmul.f32 %v1742_v53, %v2438_v56  ;;  %1745 = vrcp.f32 %v2460_v43  ;;  %v606_v13 = vsel %vm605_vm3, %v1738_v25, %v602_v22 }
 0x2fd   :  { %v784_v32 = vmul.f32 %v625_v21, %v2098_v49  ;;  %v611_v58 = vsel %vm608_vm4, %v610_v34, %v606_v13  ;;  %vm632_vm8 = vweird.f32 %v1742_v53  ;;  %v1245_v34 = vmul.f32 1.442695, %v1228_v63 }
 0x2fe   :  { %v643_v1 = vmul.f32 %v1740_v14, %v642_v12  ;;  %v628_v47 = vsub.f32 1.0, %v627_v37  ;;  %v783_v26 = vmul.f32 %v611_v58, %v2081_v0  ;;  %v649_v12 = vand.u32 2147483647, %v2436_v7  ;;  %vm633_vm11 = vmor %vm631_vm9, %vm632_vm8 }
 0x2ff   :  { %v2474_v20 = vpop.permute.xlu1 %1164  ;;  %818 = vperm.xlu2 %1695, %v784_v32   ;;  %v652_v21 = vor.u32 1.1754944e-38, %v651_v17  ;;  %v638_v63 = vor.u32 1.1754944e-38, %v637_v33  ;;  %v679_v17 = vand.u32 2147483648, %v2458_v28  ;;  %v677_v49 = vand.u32 2147483647, %v2458_v28 }
 0x300   :  { %v629_v5 = vmul.f32 %v1742_v53, %v628_v47  ;;  %v644_v25 = vadd.f32 %v1740_v14, %v643_v1  ;;  %813 = vperm.xlu0 %1696, %v783_v26   ;;  %vm650_vm10 = vcmp.eq.f32.partialorder %v649_v12, 8.507059e+37  ;;  %v665_v12 = vand.u32 2147483648, %v2460_v43 }
 0x301   :  { %v2478_v51 = vpop.eup %1743  ;;  %vm673_vm14 = vweird.f32 %v2458_v28  ;;  %vm659_vm15 = vweird.f32 %v2460_v43  ;;  %vm678_vm2 = vcmp.eq.f32.partialorder %v677_v49, 8.507059e+37  ;;  %vm664_vm3 = vcmp.eq.f32.partialorder %v663_v38, 8.507059e+37 }
 0x302   :  { %v2485_v59 = vpop.eup %1745  ;;  %v669_v22 = vmul.f32 %v2478_v51, %v2458_v28  ;;  %v2489_v0 = vpop.xlane.xlu0 %544  ;;  %v648_v7 = vsel %vm2480_vm7, %v1740_v14, %v644_v25  ;;  %v630_v37 = vadd.f32 %v1742_v53, %v629_v5  ;;  %vm674_vm13 = vweird.f32 %v2478_v51 }
 0x303   :  { %v2491_v23 = vpop.xlane.xlu2 %542  ;;  %v655_v13 = vmul.f32 %v2485_v59, %v2460_v43  ;;  %1747 = vrcp.f32 %v2489_v0  ;;  %v653_v32 = vsel %vm650_vm10, %v652_v21, %v648_v7  ;;  %v2515_v7 = vmul.f32 %v2312_v15, %v2411_v36  ;;  %vm2528_vm0 = vmor %vm673_vm14, %vm674_vm13 }
 0x304   :  { %v670_v1 = vsub.f32 1.0, %v669_v22  ;;  %1749 = vrcp.f32 %v2491_v23  ;;  %v634_v58 = vsel %vm633_vm11, %v1742_v53, %v630_v37  ;;  %v786_v14 = vmul.f32 %v653_v32, %v2143_v8 }
 0x305   :  { %v656_v47 = vsub.f32 1.0, %v655_v13  ;;  %v639_v56 = vsel %vm636_vm12, %v638_v63, %v634_v58  ;;  %v1135_v22 = vmul.f32 %v2295_v61, %v2411_v36  ;;  %1751 = vpow2.f32 %v1245_v34 }
 0x306   :  { %v671_v5 = vmul.f32 %v2478_v51, %v670_v1  ;;  %v785_v33 = vmul.f32 %v639_v56, %v2121_v10  ;;  %vm660_vm1 = vweird.f32 %v2485_v59  ;;  %v680_v28 = vor.u32 1.1754944e-38, %v679_v17 }
 0x307   :  { %v657_v26 = vmul.f32 %v2485_v59, %v656_v47  ;;  %v1170_v25 = vpop.permute.xlu1 %1169  ;;  %828 = vperm.xlu2 %1695, %v786_v14   ;;  %v666_v1 = vor.u32 1.1754944e-38, %v665_v12  ;;  %v707_v32 = vand.u32 2147483648, %v2489_v0  ;;  %vm661_vm4 = vmor %vm659_vm15, %vm660_vm1  ;;  %vm701_vm6 = vweird.f32 %v2489_v0 }
 0x308   :  { %v672_v53 = vadd.f32 %v2478_v51, %v671_v5  ;;  %823 = vperm.xlu0 %1696, %v785_v33   ;;  %v705_v5 = vand.u32 2147483647, %v2489_v0  ;;  %v1231_v33 = vsub.f32 %v1135_v22, %v1170_v25  ;;  %vm687_vm10 = vweird.f32 %v2491_v23 }
 0x309   :  { %v1748_v8 = vpop.eup %1747  ;;  %v658_v15 = vadd.f32 %v2485_v59, %v657_v26  ;;  %v708_v61 = vor.u32 1.1754944e-38, %v707_v32 }
 0x30a   :  { %v2518_v10 = vpop.eup %1749  ;;  %v697_v37 = vmul.f32 %v1748_v8, %v2489_v0  ;;  %v2522_v21 = vpop.xlane.xlu0 %548  ;;  %v676_v63 = vsel %vm2528_vm0, %v2478_v51, %v672_v53  ;;  %vm702_vm5 = vweird.f32 %v1748_v8  ;;  %vm706_vm8 = vcmp.eq.f32.partialorder %v705_v5, 8.507059e+37 }
 0x30b   :  { %v2524_v13 = vpop.xlane.xlu2 %546  ;;  %v683_v34 = vmul.f32 %v2518_v10, %v2491_v23  ;;  %1753 = vrcp.f32 %v2522_v21  ;;  %v681_v56 = vsel %vm678_vm2, %v680_v28, %v676_v63  ;;  %v662_v17 = vsel %vm661_vm4, %v2485_v59, %v658_v15  ;;  %v2546_v51 = vpop.eup %1751  ;;  %vm703_vm7 = vmor %vm701_vm6, %vm702_vm5 }
 0x30c   :  { %v698_v47 = vsub.f32 1.0, %v697_v37  ;;  %1755 = vrcp.f32 %v2524_v13  ;;  %v788_v12 = vmul.f32 %v681_v56, %v2169_v46  ;;  %v667_v53 = vsel %vm664_vm3, %v666_v1, %v662_v17 }
 0x30d   :  { %v684_v58 = vsub.f32 1.0, %v683_v34  ;;  %v787_v43 = vmul.f32 %v667_v53, %v2159_v44  ;;  %v693_v15 = vand.u32 2147483648, %v2491_v23  ;;  %v691_v46 = vand.u32 2147483647, %v2491_v23 }
 0x30e   :  { %v699_v14 = vmul.f32 %v1748_v8, %v698_v47  ;;  %vm688_vm9 = vweird.f32 %v2518_v10  ;;  %v1251_v34 = vmul.f32 1.442695, %v1231_v33  ;;  %v2577_v56 = vmul.f32 %v2327_v50, %v2411_v36 }
 0x30f   :  { %v685_v26 = vmul.f32 %v2518_v10, %v684_v58  ;;  %v2550_v49 = vpop.permute.xlu1 %1174  ;;  %838 = vperm.xlu2 %1695, %v788_v12   ;;  %v694_v32 = vor.u32 1.1754944e-38, %v693_v15  ;;  %vm689_vm11 = vmor %vm687_vm10, %vm688_vm9  ;;  %vm692_vm12 = vcmp.eq.f32.partialorder %v691_v46, 8.507059e+37  ;;  %v721_v23 = vand.u32 2147483648, %v2524_v13 }
 0x310   :  { %v1232_v38 = vsub.f32 %v2515_v7, %v2550_v49  ;;  %v700_v37 = vadd.f32 %v1748_v8, %v699_v14  ;;  %833 = vperm.xlu0 %1696, %v787_v43   ;;  %v719_v12 = vand.u32 2147483647, %v2524_v13  ;;  %vm715_vm14 = vweird.f32 %v2524_v13 }
 0x311   :  { %v2556_v59 = vpop.eup %1753  ;;  %v686_v22 = vadd.f32 %v2518_v10, %v685_v26  ;;  %v722_v15 = vor.u32 1.1754944e-38, %v721_v23  ;;  %vm729_vm2 = vweird.f32 %v2522_v21 }
 0x312   :  { %v725_v0 = vmul.f32 %v2556_v59, %v2522_v21  ;;  %v704_v25 = vsel %vm703_vm7, %v1748_v8, %v700_v37  ;;  %v1756_v28 = vpop.eup %1755  ;;  %vm720_vm0 = vcmp.eq.f32.partialorder %v719_v12, 8.507059e+37  ;;  %vm730_vm1 = vweird.f32 %v2556_v59 }
 0x313   :  { %v2563_v44 = vpop.xlane.xlu2 %550  ;;  %v709_v63 = vsel %vm706_vm8, %v708_v61, %v704_v25  ;;  %v711_v1 = vmul.f32 %v1756_v28, %v2524_v13  ;;  %v690_v14 = vsel %vm689_vm11, %v2518_v10, %v686_v22  ;;  %vm716_vm13 = vweird.f32 %v1756_v28  ;;  %vm731_vm3 = vmor %vm729_vm2, %vm730_vm1 }
 0x314   :  { %1757 = vrcp.f32 %v2563_v44  ;;  %v2570_v47 = vpop.xlane.xlu0 %552  ;;  %v726_v58 = vsub.f32 1.0, %v725_v0  ;;  %v790_v8 = vmul.f32 %v709_v63, %v2189_v40  ;;  %v695_v17 = vsel %vm692_vm12, %v694_v32, %v690_v14  ;;  %vm717_vm15 = vmor %vm715_vm14, %vm716_vm13 }
 0x315   :  { %1759 = vrcp.f32 %v2570_v47  ;;  %v712_v5 = vsub.f32 1.0, %v711_v1  ;;  %v789_v40 = vmul.f32 %v695_v17, %v2182_v57  ;;  %v1138_v13 = vmul.f32 %v2339_v54, %v2411_v36 }
 0x316   :  { %1761 = vpow2.f32 %v1251_v34  ;;  %v727_v53 = vmul.f32 %v2556_v59, %v726_v58  ;;  %v735_v63 = vand.u32 2147483648, %v2522_v21  ;;  %v2618_v12 = vmul.f32 %v2352_v4, %v2411_v36 }
 0x317   :  { %1277 = vadd.xlane.f32.xlu1 %v2546_v51  ;;  %v2581_v26 = vpop.permute.xlu1 %1179  ;;  %v713_v33 = vmul.f32 %v1756_v28, %v712_v5  ;;  %848 = vperm.xlu2 %1695, %v790_v8   ;;  %vm757_vm7 = vweird.f32 %v2570_v47  ;;  %vm743_vm8 = vweird.f32 %v2563_v44 }
 0x318   :  { %v1233_v50 = vsub.f32 %v2577_v56, %v2581_v26  ;;  %843 = vperm.xlu0 %1696, %v789_v40   ;;  %v728_v22 = vadd.f32 %v2556_v59, %v727_v53  ;;  %v736_v17 = vor.u32 1.1754944e-38, %v735_v63 }
 0x319   :  { %v714_v57 = vadd.f32 %v1756_v28, %v713_v33 }
 0x31a   :  { %v2585_v10 = vpop.eup %1757  ;;  %v732_v23 = vsel %vm731_vm3, %v2556_v59, %v728_v22 }
 0x31b   :  { %v739_v43 = vmul.f32 %v2585_v10, %v2563_v44  ;;  %v2593_v37 = vpop.xlane.xlu2 %554  ;;  %v2595_v61 = vpop.eup %1759  ;;  %v718_v0 = vsel %vm717_vm15, %v1756_v28, %v714_v57  ;;  %v733_v28 = vand.u32 2147483647, %v2522_v21  ;;  %vm744_vm6 = vweird.f32 %v2585_v10 }
 0x31c   :  { %1763 = vrcp.f32 %v2593_v37  ;;  %v753_v46 = vmul.f32 %v2595_v61, %v2570_v47  ;;  %v2600_v25 = vpop.eup %1761  ;;  %v723_v34 = vsel %vm720_vm0, %v722_v15, %v718_v0  ;;  %vm758_vm5 = vweird.f32 %v2595_v61  ;;  %vm745_vm10 = vmor %vm743_vm8, %vm744_vm6 }
 0x31d   :  { %v740_v1 = vsub.f32 1.0, %v739_v43  ;;  %v791_v58 = vmul.f32 %v723_v34, %v2194_v35  ;;  %vm734_vm4 = vcmp.eq.f32.partialorder %v733_v28, 8.507059e+37  ;;  %v749_v57 = vand.u32 2147483648, %v2563_v44  ;;  %vm759_vm9 = vmor %vm757_vm7, %vm758_vm5 }
 0x31e   :  { %v754_v32 = vsub.f32 1.0, %v753_v46  ;;  %v737_v21 = vsel %vm734_vm4, %v736_v17, %v732_v23  ;;  %v761_v15 = vand.u32 2147483647, %v2570_v47  ;;  %v777_v28 = vand.u32 2147483648, %v2593_v37 }
 0x31f   :  { %1283 = vadd.xlane.f32.xlu1 %v2600_v25  ;;  %v1185_v8 = vpop.permute.xlu1 %1184  ;;  %1063 = vperm.xlu2 %1695, %v1951_v3   ;;  %v741_v33 = vmul.f32 %v2585_v10, %v740_v1  ;;  %v763_v3 = vand.u32 2147483648, %v2570_v47  ;;  %v792_v4 = vmul.f32 %v737_v21, %v2205_v16  ;;  %v750_v1 = vor.u32 1.1754944e-38, %v749_v57 }
 0x320   :  { %v1234_v54 = vsub.f32 %v1138_v13, %v1185_v8  ;;  %v755_v14 = vmul.f32 %v2595_v61, %v754_v32  ;;  %853 = vperm.xlu0 %1696, %v791_v58   ;;  %v747_v13 = vand.u32 2147483647, %v2563_v44  ;;  %vm762_vm11 = vcmp.eq.f32.partialorder %v761_v15, 8.507059e+37 }
 0x321   :  { %v742_v43 = vadd.f32 %v2585_v10, %v741_v33  ;;  %v764_v63 = vor.u32 1.1754944e-38, %v763_v3  ;;  %v2643_v44 = vmul.f32 %v2360_v62, %v2411_v36  ;;  %vm771_vm14 = vweird.f32 %v2593_v37 }
 0x322   :  { %v1764_v5 = vpop.eup %1763  ;;  %v1257_v40 = vmul.f32 1.442695, %v1234_v54  ;;  %v756_v53 = vadd.f32 %v2595_v61, %v755_v14  ;;  %vm748_vm12 = vcmp.eq.f32.partialorder %v747_v13, 8.507059e+37  ;;  %v775_v14 = vand.u32 2147483647, %v2593_v37 }
 0x323   :  { %v767_v35 = vmul.f32 %v1764_v5, %v2593_v37  ;;  %v746_v16 = vsel %vm745_vm10, %v2585_v10, %v742_v43  ;;  %vm772_vm13 = vweird.f32 %v1764_v5  ;;  %v778_v23 = vor.u32 1.1754944e-38, %v777_v28 }
 0x324   :  { %1765 = vpow2.f32 %v1257_v40  ;;  %v760_v22 = vsel %vm759_vm9, %v2595_v61, %v756_v53  ;;  %v751_v58 = vsel %vm748_vm12, %v750_v1, %v746_v16  ;;  %vm773_vm15 = vmor %vm771_vm14, %vm772_vm13  ;;  %vm776_vm0 = vcmp.eq.f32.partialorder %v775_v14, 8.507059e+37 }
 0x325   :  { %v768_v59 = vsub.f32 1.0, %v767_v35  ;;  %v765_v32 = vsel %vm762_vm11, %v764_v63, %v760_v22  ;;  %v793_v10 = vmul.f32 %v751_v58, %v2210_v48  ;;  %v2659_v37 = vmul.f32 %v2374_v31, %v2411_v36 }
 0x326   :  { %v794_v8 = vmul.f32 %v765_v32, %v2220_v19  ;;  %v1141_v19 = vmul.f32 %v2367_v11, %v2411_v36  ;;  %v1144_v31 = vmul.f32 %v2388_v9, %v2411_v36 }
 0x327   :  { %v2629_v46 = vpop.permute.xlu1 %1189  ;;  %858 = vperm.xlu2 %1695, %v792_v4   ;;  %v769_v47 = vmul.f32 %v1764_v5, %v768_v59  ;;  %v2854_v59 = vsub.f32 %v2415_v30, %v2419_v39 }
 0x328   :  { %v1235_v0 = vsub.f32 %v2618_v12, %v2629_v46  ;;  %1068 = vperm.xlu0 %1696, %v1957_v6   ;;  %v2859_v12 = vld [vmem:[#allocation31_spill] sm:$0xff] }
 0x329   :  { %v770_v61 = vadd.f32 %v1764_v5, %v769_v47  ;;  %v1243_v43 = vmul.f32 1.442695, %v2854_v59 }
 0x32a   :  { %v2636_v34 = vpop.eup %1765 }
 0x32b   :  { %1289 = vadd.xlane.f32.xlu1 %v2636_v34  ;;  %v774_v62 = vsel %vm773_vm15, %v1764_v5, %v770_v61 }
 0x32c   :  { %v779_v17 = vsel %vm776_vm0, %v778_v23, %v774_v62 }
 0x32d   :  { %v795_v35 = vmul.f32 %v779_v17, %v2227_v55  ;;  %v2670_v55 = vmul.f32 %v2381_v41, %v2411_v36 }
 0x32f   :  { %v2647_v6 = vpop.permute.xlu1 %1194  ;;  %868 = vperm.xlu2 %1695, %v794_v8  }
 0x330   :  { %v1236_v54 = vsub.f32 %v2643_v44, %v2647_v6  ;;  %863 = vperm.xlu0 %1696, %v793_v10  }
 0x334   :  { %v804_v4 = vpop.permute.xlu2 %803 }
 0x335   :  { %v877_v47 = vmul.f32 %v2212_v42, %v804_v4  ;;  %v2856_v4 = vld [vmem:[#allocation28_spill] sm:$0xff] }
 0x337   :  { %v1200_v33 = vpop.permute.xlu1 %1199 }
 0x338   :  { %v1237_v40 = vsub.f32 %v1141_v19, %v1200_v33  ;;  %873 = vperm.xlu0 %1696, %v795_v35  }
 0x33a   :  { %v1263_v48 = vmul.f32 1.442695, %v1237_v40 }
 0x33c   :  { %1767 = vpow2.f32 %v1263_v48 }
 0x33d   :  { %1769 = vpow2.f32 %v1243_v43  ;;  %v2855_v43 = vld [vmem:[#allocation27_spill] sm:$0xff] }
 0x33f   :  { %v2661_v21 = vpop.permute.xlu1 %1204 }
 0x340   :  { %v1238_v5 = vsub.f32 %v2659_v37, %v2661_v21 }
 0x342   :  { %v2665_v53 = vpop.eup %1767 }
 0x343   :  { %1295 = vadd.xlane.f32.xlu1 %v2665_v53  ;;  %v2681_v41 = vpop.eup %1769 }
 0x347   :  { %v2672_v11 = vpop.permute.xlu1 %1209 }
 0x348   :  { %v1239_v3 = vsub.f32 %v2670_v55, %v2672_v11 }
 0x34f   :  { %v1215_v57 = vpop.permute.xlu1 %1214 }
 0x350   :  { %v1240_v15 = vsub.f32 %v1144_v31, %v1215_v57 }
 0x352   :  { %v1269_v13 = vmul.f32 1.442695, %v1240_v15 }
 0x354   :  { %1771 = vpow2.f32 %v1269_v13 }
 0x357   :  { %v1220_v59 = vpop.permute.xlu1 %1219 }
 0x358   :  { %1275 = vadd.xlane.f32.xlu2 %v2681_v41 }
 0x359   :  { %v819_v63 = vpop.permute.xlu2 %818 }
 0x35a   :  { %v2683_v22 = vpop.eup %1771  ;;  %v880_v14 = vmul.f32 %v2259_v52, %v819_v63  ;;  %v1253_v52 = vmul.f32 1.442695, %v1232_v38  ;;  %v2857_v63 = vld [vmem:[#allocation29_spill] sm:$0xff] }
 0x35b   :  { %1301 = vadd.xlane.f32.xlu1 %v2683_v22 }
 0x360   :  { %v799_v9 = vpop.permute.xlu0 %798 }
 0x361   :  { %v876_v30 = vmul.f32 %v2229_v29, %v799_v9  ;;  %v829_v39 = vpop.permute.xlu2 %828  ;;  %v1225_v9 = vpop.permute.xlu1 %1224 }
 0x363   :  { %v892_v16 = vadd.f32 %v877_v47, %v876_v30 }
 0x368   :  { %v809_v1 = vpop.permute.xlu0 %808 }
 0x369   :  { %v878_v32 = vmul.f32 %v2237_v27, %v809_v1  ;;  %v839_v58 = vpop.permute.xlu2 %838  ;;  %v882_v27 = vmul.f32 %v2276_v45, %v829_v39 }
 0x36a   :  { %v884_v57 = vmul.f32 %v2855_v43, %v839_v58 }
 0x36b   :  { %v893_v61 = vadd.f32 %v892_v16, %v878_v32  ;;  %v2858_v16 = vld [vmem:[#allocation30_spill] sm:$0xff]  ;;  %v1265_v32 = vmul.f32 1.442695, %v1238_v5 }
 0x371   :  { %v849_v28 = vpop.permute.xlu2 %848 }
 0x372   :  { %v814_v8 = vpop.permute.xlu0 %813  ;;  %v886_v7 = vmul.f32 %v2857_v63, %v849_v28 }
 0x373   :  { %v879_v10 = vmul.f32 %v2255_v60, %v814_v8 }
 0x375   :  { %v894_v62 = vadd.f32 %v893_v61, %v879_v10  ;;  %v2860_v61 = vld [vmem:[#allocation35_spill] sm:$0xff] }
 0x376   :  { %v1145_v28 = vmul.f32 %v2860_v61, %v2411_v36 }
 0x377   :  { %v895_v23 = vadd.f32 %v894_v62, %v880_v14 }
 0x378   :  { %v1241_v14 = vsub.f32 %v1145_v28, %v1220_v59 }
 0x379   :  { %v1064_v17 = vpop.permute.xlu2 %1063 }
 0x37a   :  { %v824_v19 = vpop.permute.xlu0 %823  ;;  %v1133_v42 = vmul.f32 %v1064_v17, %v2411_v36  ;;  %v1271_v37 = vmul.f32 1.442695, %v1241_v14 }
 0x37b   :  { %v881_v29 = vmul.f32 %v2272_v18, %v824_v19 }
 0x37c   :  { %v1229_v33 = vsub.f32 %v1133_v42, %v2446_v24 }
 0x37d   :  { %v896_v35 = vadd.f32 %v895_v23, %v881_v29 }
 0x37e   :  { %v1247_v40 = vmul.f32 1.442695, %v1229_v33  ;;  %v2861_v33 = vld [vmem:[#allocation32_spill] sm:$0xff] }
 0x37f   :  { %v897_v48 = vadd.f32 %v896_v35, %v882_v27  ;;  %v1255_v35 = vmul.f32 1.442695, %v1233_v50 }
 0x380   :  { %1773 = vpow2.f32 %v1247_v40 }
 0x381   :  { %1775 = vpow2.f32 %v1253_v52  ;;  %v859_v30 = vpop.permute.xlu2 %858  ;;  %v1261_v52 = vmul.f32 1.442695, %v1236_v54  ;;  %v2862_v54 = vld [vmem:[#allocation36_spill] sm:$0xff] }
 0x382   :  { %v834_v31 = vpop.permute.xlu0 %833  ;;  %v888_v46 = vmul.f32 %v2859_v12, %v859_v30 }
 0x383   :  { %v883_v60 = vmul.f32 %v2289_v2, %v834_v31  ;;  %v1259_v2 = vmul.f32 1.442695, %v1235_v0 }
 0x385   :  { %v898_v15 = vadd.f32 %v897_v48, %v883_v60  ;;  %1777 = vpow2.f32 %v1259_v2 }
 0x386   :  { %v2701_v18 = vpop.eup %1773  ;;  %1779 = vpow2.f32 %v1265_v32 }
 0x387   :  { %1279 = vadd.xlane.f32.xlu0 %v2701_v18  ;;  %v899_v45 = vadd.f32 %v898_v15, %v884_v57  ;;  %v2709_v38 = vpop.eup %1775  ;;  %v1267_v15 = vmul.f32 1.442695, %v1239_v3 }
 0x389   :  { %v2757_v11 = vpop.permute.xlu2 %868 }
 0x38a   :  { %v844_v24 = vpop.permute.xlu0 %843  ;;  %v1278_v8 = vpop.xlane.xlu1 %1277 }
 0x38b   :  { %v885_v13 = vmul.f32 %v2856_v4, %v844_v24  ;;  %v2717_v58 = vpop.eup %1777  ;;  %1781 = vrcp.f32 %v1278_v8  ;;  %v1332_v26 = vand.u32 2147483648, %v1278_v8  ;;  %vm1326_vm2 = vweird.f32 %v1278_v8  ;;  %v2863_v4 = vld [vmem:[#allocation12_spill] sm:$0xff] }
 0x38c   :  { %v2724_v5 = vpop.eup %1779  ;;  %1783 = vpow2.f32 %v1271_v37  ;;  %v1330_v50 = vand.u32 2147483647, %v1278_v8 }
 0x38d   :  { %v900_v49 = vadd.f32 %v899_v45, %v885_v13  ;;  %v1333_v57 = vor.u32 1.1754944e-38, %v1332_v26  ;;  %v1146_v45 = vmul.f32 %v2862_v54, %v2411_v36 }
 0x38e   :  { %vm1331_vm4 = vcmp.eq.f32.partialorder %v1330_v50, 8.507059e+37 }
 0x38f   :  { %1285 = vadd.xlane.f32.xlu0 %v2709_v38  ;;  %v901_v47 = vadd.f32 %v900_v49, %v886_v7  ;;  %v1242_v24 = vsub.f32 %v1146_v45, %v1225_v9 }
 0x391   :  { %v1782_v19 = vpop.eup %1781  ;;  %v1273_v2 = vmul.f32 1.442695, %v1242_v24 }
 0x392   :  { %v854_v39 = vpop.permute.xlu0 %853  ;;  %v1322_v29 = vmul.f32 %v1782_v19, %v1278_v8  ;;  %v2733_v48 = vpop.eup %1783  ;;  %vm1327_vm1 = vweird.f32 %v1782_v19 }
 0x393   :  { %v887_v1 = vmul.f32 %v2858_v16, %v854_v39  ;;  %vm1328_vm3 = vmor %vm1326_vm2, %vm1327_vm1  ;;  %v1284_v55 = vpop.xlane.xlu1 %1283 }
 0x394   :  { %v1323_v31 = vsub.f32 1.0, %v1322_v29  ;;  %vm1368_vm10 = vweird.f32 %v1284_v55  ;;  %v2864_v29 = vld [vmem:[#allocation11_spill] sm:$0xff] }
 0x395   :  { %v902_v0 = vadd.f32 %v901_v47, %v887_v1 }
 0x396   :  { %v1324_v60 = vmul.f32 %v1782_v19, %v1323_v31 }
 0x397   :  { %1291 = vadd.xlane.f32.xlu0 %v2717_v58  ;;  %v903_v10 = vadd.f32 %v902_v0, %v888_v46 }
 0x398   :  { %v1325_v56 = vadd.f32 %v1782_v19, %v1324_v60 }
 0x39a   :  { %v1069_v62 = vpop.permute.xlu0 %1068  ;;  %v1329_v43 = vsel %vm1328_vm3, %v1782_v19, %v1325_v56 }
 0x39b   :  { %v1134_v23 = vmul.f32 %v1069_v62, %v2411_v36  ;;  %v1334_v44 = vsel %vm1331_vm4, %v1333_v57, %v1329_v43 }
 0x39c   :  { %v1532_v13 = vmul.f32 %v1334_v44, %v2863_v4 }
 0x39d   :  { %v1230_v21 = vsub.f32 %v1134_v23, %v2474_v20 }
 0x39e   :  { %v1290_v7 = vpop.xlane.xlu1 %1289 }
 0x39f   :  { %v1249_v17 = vmul.f32 1.442695, %v1230_v21  ;;  %1297 = vadd.xlane.f32.xlu0 %v2724_v5  ;;  %v1416_v43 = vand.u32 2147483648, %v1290_v7  ;;  %vm1410_vm14 = vweird.f32 %v1290_v7  ;;  %v1414_v57 = vand.u32 2147483647, %v1290_v7 }
 0x3a1   :  { %1785 = vpow2.f32 %v1249_v17  ;;  %v1374_v17 = vand.u32 2147483648, %v1284_v55  ;;  %v1417_v4 = vor.u32 1.1754944e-38, %v1416_v43  ;;  %vm1415_vm0 = vcmp.eq.f32.partialorder %v1414_v57, 8.507059e+37  ;;  %v2869_v43 = vld [vmem:[#allocation13_spill] sm:$0xff] }
 0x3a2   :  { %v864_v42 = vpop.permute.xlu0 %863  ;;  %1787 = vpow2.f32 %v1255_v35 }
 0x3a3   :  { %v889_v27 = vmul.f32 %v2861_v33, %v864_v42  ;;  %1789 = vpow2.f32 %v1261_v52  ;;  %v1372_v42 = vand.u32 2147483647, %v1284_v55  ;;  %v1375_v60 = vor.u32 1.1754944e-38, %v1374_v17 }
 0x3a4   :  { %1791 = vpow2.f32 %v1267_v15  ;;  %v2865_v15 = vld [vmem:[#allocation15_spill] sm:$0xff] }
 0x3a5   :  { %v2731_v40 = vadd.f32 %v903_v10, %v889_v27  ;;  %1793 = vpow2.f32 %v1273_v2  ;;  %vm1373_vm12 = vcmp.eq.f32.partialorder %v1372_v42, 8.507059e+37 }
 0x3a6   :  { %1795 = vrcp.f32 %v1284_v55 }
 0x3a7   :  { %v2735_v20 = vpop.eup %1785  ;;  %1303 = vadd.xlane.f32.xlu0 %v2733_v48 }
 0x3a8   :  { %1281 = vadd.xlane.f32.xlu2 %v2735_v20  ;;  %v2742_v59 = vpop.eup %1787 }
 0x3a9   :  { %v2748_v6 = vpop.eup %1789 }
 0x3aa   :  { %v2754_v63 = vpop.eup %1791 }
 0x3ab   :  { %v2759_v3 = vpop.eup %1793 }
 0x3ac   :  { %v1796_v36 = vpop.eup %1795 }
 0x3ad   :  { %v1364_v9 = vmul.f32 %v1796_v36, %v1284_v55  ;;  %vm1369_vm7 = vweird.f32 %v1796_v36 }
 0x3ae   :  { %vm1370_vm11 = vmor %vm1368_vm10, %vm1369_vm7 }
 0x3af   :  { %v1365_v30 = vsub.f32 1.0, %v1364_v9 }
 0x3b0   :  { %1287 = vadd.xlane.f32.xlu2 %v2742_v59 }
 0x3b1   :  { %v1366_v12 = vmul.f32 %v1796_v36, %v1365_v30 }
 0x3b3   :  { %v1367_v14 = vadd.f32 %v1796_v36, %v1366_v12 }
 0x3b5   :  { %v1371_v31 = vsel %vm1370_vm11, %v1796_v36, %v1367_v14 }
 0x3b6   :  { %v2762_v39 = vpop.xlane.xlu1 %1295  ;;  %v1376_v52 = vsel %vm1373_vm12, %v1375_v60, %v1371_v31 }
 0x3b7   :  { %v1535_v44 = vmul.f32 %v1376_v52, %v2865_v15  ;;  %v1458_v36 = vand.u32 2147483648, %v2762_v39  ;;  %vm1452_vm2 = vweird.f32 %v2762_v39 }
 0x3b8   :  { %1293 = vadd.xlane.f32.xlu2 %v2748_v6 }
 0x3bb   :  { %1554 = vperm.xlu0 %1696, %v1532_v13  }
 0x3c0   :  { %1299 = vadd.xlane.f32.xlu2 %v2754_v63 }
 0x3c8   :  { %1305 = vadd.xlane.f32.xlu2 %v2759_v3 }
 0x3cb   :  { %v1276_v49 = vpop.xlane.xlu2 %1275 }
 0x3cc   :  { %1797 = vrcp.f32 %v1276_v49  ;;  %v1318_v46 = vand.u32 2147483648, %v1276_v49  ;;  %v1316_v28 = vand.u32 2147483647, %v1276_v49  ;;  %vm1312_vm6 = vweird.f32 %v1276_v49 }
 0x3cd   :  { %1799 = vrcp.f32 %v1290_v7 }
 0x3ce   :  { %1801 = vrcp.f32 %v2762_v39  ;;  %v1319_v10 = vor.u32 1.1754944e-38, %v1318_v46  ;;  %vm1317_vm9 = vcmp.eq.f32.partialorder %v1316_v28, 8.507059e+37  ;;  %v1302_v23 = vpop.xlane.xlu1 %1301 }
 0x3cf   :  { %1803 = vrcp.f32 %v1302_v23  ;;  %v1500_v46 = vand.u32 2147483648, %v1302_v23 }
 0x3d2   :  { %v1798_v47 = vpop.eup %1797 }
 0x3d3   :  { %v1308_v16 = vmul.f32 %v1798_v47, %v1276_v49  ;;  %v1800_v1 = vpop.eup %1799  ;;  %vm1313_vm5 = vweird.f32 %v1798_v47  ;;  %v1456_v49 = vand.u32 2147483647, %v2762_v39 }
 0x3d4   :  { %v1406_v0 = vmul.f32 %v1800_v1, %v1290_v7  ;;  %vm1314_vm8 = vmor %vm1312_vm6, %vm1313_vm5  ;;  %v1802_v21 = vpop.eup %1801  ;;  %vm1411_vm13 = vweird.f32 %v1800_v1  ;;  %v2866_v7 = vld [vmem:[#allocation18_spill] sm:$0xff]  ;;  %vm1494_vm6 = vweird.f32 %v1302_v23 }
 0x3d5   :  { %v1309_v32 = vsub.f32 1.0, %v1308_v16  ;;  %v1448_v35 = vmul.f32 %v1802_v21, %v2762_v39  ;;  %v1804_v50 = vpop.eup %1803  ;;  %vm1412_vm15 = vmor %vm1410_vm14, %vm1411_vm13  ;;  %vm1453_vm1 = vweird.f32 %v1802_v21  ;;  %v1459_v16 = vor.u32 1.1754944e-38, %v1458_v36 }
 0x3d6   :  { %v1407_v62 = vsub.f32 1.0, %v1406_v0  ;;  %v1490_v45 = vmul.f32 %v1804_v50, %v1302_v23  ;;  %vm1454_vm3 = vmor %vm1452_vm2, %vm1453_vm1  ;;  %vm1457_vm4 = vcmp.eq.f32.partialorder %v1456_v49, 8.507059e+37  ;;  %vm1495_vm5 = vweird.f32 %v1804_v50 }
 0x3d7   :  { %v1310_v61 = vmul.f32 %v1798_v47, %v1309_v32  ;;  %v1449_v26 = vsub.f32 1.0, %v1448_v35  ;;  %v1498_v0 = vand.u32 2147483647, %v1302_v23  ;;  %vm1496_vm7 = vmor %vm1494_vm6, %vm1495_vm5 }
 0x3d8   :  { %v1408_v27 = vmul.f32 %v1800_v1, %v1407_v62  ;;  %v1491_v55 = vsub.f32 1.0, %v1490_v45  ;;  %v2868_v62 = vld [vmem:[#allocation24_spill] sm:$0xff] }
 0x3d9   :  { %v1311_v8 = vadd.f32 %v1798_v47, %v1310_v61  ;;  %v1450_v54 = vmul.f32 %v1802_v21, %v1449_v26  ;;  %v2867_v61 = vld [vmem:[#allocation21_spill] sm:$0xff] }
 0x3da   :  { %v1409_v56 = vadd.f32 %v1800_v1, %v1408_v27 }
 0x3db   :  { %v1315_v37 = vsel %vm1314_vm8, %v1798_v47, %v1311_v8  ;;  %v1451_v2 = vadd.f32 %v1802_v21, %v1450_v54  ;;  %v1492_v47 = vmul.f32 %v1804_v50, %v1491_v55  ;;  %v1501_v8 = vor.u32 1.1754944e-38, %v1500_v46 }
 0x3dc   :  { %v1320_v19 = vsel %vm1317_vm9, %v1319_v10, %v1315_v37  ;;  %v1413_v24 = vsel %vm1412_vm15, %v1800_v1, %v1409_v56  ;;  %v2772_v1 = vpop.permute.xlu0 %873  ;;  %vm1499_vm8 = vcmp.eq.f32.partialorder %v1498_v0, 8.507059e+37 }
 0x3dd   :  { %v1531_v33 = vmul.f32 %v1320_v19, %v2864_v29  ;;  %v1418_v13 = vsel %vm1415_vm0, %v1417_v4, %v1413_v24  ;;  %v1455_v30 = vsel %vm1454_vm3, %v1802_v21, %v1451_v2  ;;  %v1493_v12 = vadd.f32 %v1804_v50, %v1492_v47 }
 0x3de   :  { %v1538_v9 = vmul.f32 %v1418_v13, %v2866_v7  ;;  %v1460_v32 = vsel %vm1457_vm4, %v1459_v16, %v1455_v30  ;;  %v2870_v7 = vld [vmem:[#allocation16_spill] sm:$0xff] }
 0x3df   :  { %1549 = vperm.xlu1 %1694, %v1531_v33   ;;  %v1541_v28 = vmul.f32 %v1460_v32, %v2867_v61  ;;  %v1497_v39 = vsel %vm1496_vm7, %v1804_v50, %v1493_v12 }
 0x3e0   :  { %v1502_v14 = vsel %vm1499_vm8, %v1501_v8, %v1497_v39 }
 0x3e1   :  { %v1544_v37 = vmul.f32 %v1502_v14, %v2868_v62 }
 0x3e7   :  { %1569 = vperm.xlu1 %1694, %v1535_v44  }
 0x3ef   :  { %1584 = vperm.xlu1 %1694, %v1538_v9  }
 0x3f7   :  { %1599 = vperm.xlu1 %1694, %v1541_v28  }
 0x3fa   :  { %v1280_v10 = vpop.xlane.xlu0 %1279 }
 0x3fb   :  { %1805 = vrcp.f32 %v1280_v10  ;;  %v1346_v23 = vand.u32 2147483648, %v1280_v10  ;;  %v1344_v33 = vand.u32 2147483647, %v1280_v10  ;;  %vm1340_vm10 = vweird.f32 %v1280_v10 }
 0x3fd   :  { %v1347_v31 = vor.u32 1.1754944e-38, %v1346_v23  ;;  %vm1345_vm12 = vcmp.eq.f32.partialorder %v1344_v33, 8.507059e+37 }
 0x3ff   :  { %1614 = vperm.xlu1 %1694, %v1544_v37  }
 0x401   :  { %v1806_v21 = vpop.eup %1805 }
 0x402   :  { %v1336_v17 = vmul.f32 %v1806_v21, %v1280_v10  ;;  %v1286_v19 = vpop.xlane.xlu0 %1285  ;;  %vm1341_vm9 = vweird.f32 %v1806_v21 }
 0x403   :  { %1807 = vrcp.f32 %v1286_v19  ;;  %vm1342_vm11 = vmor %vm1340_vm10, %vm1341_vm9  ;;  %v1388_v44 = vand.u32 2147483648, %v1286_v19  ;;  %v1386_v54 = vand.u32 2147483647, %v1286_v19  ;;  %vm1382_vm14 = vweird.f32 %v1286_v19 }
 0x404   :  { %v1337_v42 = vsub.f32 1.0, %v1336_v17 }
 0x405   :  { %v1389_v4 = vor.u32 1.1754944e-38, %v1388_v44  ;;  %vm1387_vm0 = vcmp.eq.f32.partialorder %v1386_v54, 8.507059e+37 }
 0x406   :  { %v1338_v29 = vmul.f32 %v1806_v21, %v1337_v42 }
 0x408   :  { %v1339_v27 = vadd.f32 %v1806_v21, %v1338_v29 }
 0x409   :  { %v1808_v35 = vpop.eup %1807 }
 0x40a   :  { %v1378_v60 = vmul.f32 %v1808_v35, %v1286_v19  ;;  %v1292_v52 = vpop.xlane.xlu0 %1291  ;;  %v1343_v56 = vsel %vm1342_vm11, %v1806_v21, %v1339_v27  ;;  %vm1383_vm13 = vweird.f32 %v1808_v35  ;;  %v2871_v21 = vld [vmem:[#allocation19_spill] sm:$0xff] }
 0x40b   :  { %1809 = vrcp.f32 %v1292_v52  ;;  %v1348_v50 = vsel %vm1345_vm12, %v1347_v31, %v1343_v56  ;;  %vm1384_vm15 = vmor %vm1382_vm14, %vm1383_vm13  ;;  %v1430_v30 = vand.u32 2147483648, %v1292_v52  ;;  %vm1424_vm2 = vweird.f32 %v1292_v52 }
 0x40c   :  { %v1379_v26 = vsub.f32 1.0, %v1378_v60  ;;  %v1533_v57 = vmul.f32 %v1348_v50, %v2869_v43  ;;  %v1428_v32 = vand.u32 2147483647, %v1292_v52  ;;  %v2872_v50 = vld [vmem:[#allocation22_spill] sm:$0xff] }
 0x40d   :  { %v1431_v28 = vor.u32 1.1754944e-38, %v1430_v30 }
 0x40e   :  { %v1380_v15 = vmul.f32 %v1808_v35, %v1379_v26  ;;  %1559 = vperm.xlu2 %1695, %v1533_v57   ;;  %vm1429_vm4 = vcmp.eq.f32.partialorder %v1428_v32, 8.507059e+37 }
 0x410   :  { %v1381_v45 = vadd.f32 %v1808_v35, %v1380_v15 }
 0x411   :  { %v1810_v24 = vpop.eup %1809 }
 0x412   :  { %v1420_v13 = vmul.f32 %v1810_v24, %v1292_v52  ;;  %v1298_v2 = vpop.xlane.xlu0 %1297  ;;  %v1385_v55 = vsel %vm1384_vm15, %v1808_v35, %v1381_v45  ;;  %vm1425_vm1 = vweird.f32 %v1810_v24 }
 0x413   :  { %1811 = vrcp.f32 %v1298_v2  ;;  %v1390_v49 = vsel %vm1387_vm0, %v1389_v4, %v1385_v55  ;;  %vm1426_vm3 = vmor %vm1424_vm2, %vm1425_vm1  ;;  %v1472_v10 = vand.u32 2147483648, %v1298_v2  ;;  %v1470_v37 = vand.u32 2147483647, %v1298_v2 }
 0x414   :  { %v1421_v36 = vsub.f32 1.0, %v1420_v13  ;;  %v1536_v9 = vmul.f32 %v1390_v49, %v2870_v7  ;;  %vm1466_vm6 = vweird.f32 %v1298_v2 }
 0x415   :  { %v1473_v29 = vor.u32 1.1754944e-38, %v1472_v10  ;;  %vm1471_vm8 = vcmp.eq.f32.partialorder %v1470_v37, 8.507059e+37 }
 0x416   :  { %v1422_v47 = vmul.f32 %v1810_v24, %v1421_v36  ;;  %1574 = vperm.xlu2 %1695, %v1536_v9  }
 0x418   :  { %v1423_v16 = vadd.f32 %v1810_v24, %v1422_v47 }
 0x419   :  { %v1812_v12 = vpop.eup %1811 }
 0x41a   :  { %v1462_v46 = vmul.f32 %v1812_v12, %v1298_v2  ;;  %v1304_v0 = vpop.xlane.xlu0 %1303  ;;  %v1427_v61 = vsel %vm1426_vm3, %v1810_v24, %v1423_v16  ;;  %vm1467_vm5 = vweird.f32 %v1812_v12  ;;  %v2873_v16 = vld [vmem:[#allocation25_spill] sm:$0xff] }
 0x41b   :  { %1813 = vrcp.f32 %v1304_v0  ;;  %v1282_v39 = vpop.xlane.xlu2 %1281  ;;  %v1432_v14 = vsel %vm1429_vm4, %v1431_v28, %v1427_v61  ;;  %vm1468_vm7 = vmor %vm1466_vm6, %vm1467_vm5  ;;  %v1514_v56 = vand.u32 2147483648, %v1304_v0  ;;  %v1512_v15 = vand.u32 2147483647, %v1304_v0 }
 0x41c   :  { %v1463_v8 = vsub.f32 1.0, %v1462_v46  ;;  %1815 = vrcp.f32 %v1282_v39  ;;  %v1539_v17 = vmul.f32 %v1432_v14, %v2871_v21  ;;  %v1360_v54 = vand.u32 2147483648, %v1282_v39  ;;  %v2874_v46 = vld [vmem:[#allocation14_spill] sm:$0xff] }
 0x41d   :  { %vm1508_vm11 = vweird.f32 %v1304_v0  ;;  %v1358_v24 = vand.u32 2147483647, %v1282_v39  ;;  %v1515_v4 = vor.u32 1.1754944e-38, %v1514_v56  ;;  %vm1354_vm13 = vweird.f32 %v1282_v39 }
 0x41e   :  { %v1464_v62 = vmul.f32 %v1812_v12, %v1463_v8  ;;  %1589 = vperm.xlu2 %1695, %v1539_v17   ;;  %vm1513_vm14 = vcmp.eq.f32.partialorder %v1512_v15, 8.507059e+37  ;;  %v1361_v36 = vor.u32 1.1754944e-38, %v1360_v54  ;;  %v2876_v15 = vld [vmem:[#allocation20_spill] sm:$0xff] }
 0x41f   :  { %vm1359_vm0 = vcmp.eq.f32.partialorder %v1358_v24, 8.507059e+37 }
 0x420   :  { %v1465_v19 = vadd.f32 %v1812_v12, %v1464_v62 }
 0x421   :  { %v1814_v42 = vpop.eup %1813 }
 0x422   :  { %v1816_v23 = vpop.eup %1815  ;;  %v1504_v33 = vmul.f32 %v1814_v42, %v1304_v0  ;;  %v1469_v27 = vsel %vm1468_vm7, %v1812_v12, %v1465_v19  ;;  %vm1509_vm9 = vweird.f32 %v1814_v42 }
 0x423   :  { %v1350_v35 = vmul.f32 %v1816_v23, %v1282_v39  ;;  %v1288_v31 = vpop.xlane.xlu2 %1287  ;;  %v1474_v60 = vsel %vm1471_vm8, %v1473_v29, %v1469_v27  ;;  %vm1355_vm10 = vweird.f32 %v1816_v23  ;;  %vm1510_vm12 = vmor %vm1508_vm11, %vm1509_vm9 }
 0x424   :  { %v1505_v52 = vsub.f32 1.0, %v1504_v33  ;;  %1817 = vrcp.f32 %v1288_v31  ;;  %v1542_v43 = vmul.f32 %v1474_v60, %v2872_v50  ;;  %vm1356_vm15 = vmor %vm1354_vm13, %vm1355_vm10  ;;  %v1402_v28 = vand.u32 2147483648, %v1288_v31 }
 0x425   :  { %v1351_v26 = vsub.f32 1.0, %v1350_v35  ;;  %v1400_v39 = vand.u32 2147483647, %v1288_v31  ;;  %vm1396_vm2 = vweird.f32 %v1288_v31 }
 0x426   :  { %v1506_v57 = vmul.f32 %v1814_v42, %v1505_v52  ;;  %1604 = vperm.xlu2 %1695, %v1542_v43   ;;  %v1403_v14 = vor.u32 1.1754944e-38, %v1402_v28 }
 0x427   :  { %v1352_v44 = vmul.f32 %v1816_v23, %v1351_v26  ;;  %vm1401_vm4 = vcmp.eq.f32.partialorder %v1400_v39, 8.507059e+37 }
 0x428   :  { %v1507_v45 = vadd.f32 %v1814_v42, %v1506_v57 }
 0x429   :  { %v1353_v13 = vadd.f32 %v1816_v23, %v1352_v44 }
 0x42a   :  { %v1818_v2 = vpop.eup %1817  ;;  %v1511_v55 = vsel %vm1510_vm12, %v1814_v42, %v1507_v45  ;;  %v2875_v42 = vld [vmem:[#allocation17_spill] sm:$0xff] }
 0x42b   :  { %v1392_v49 = vmul.f32 %v1818_v2, %v1288_v31  ;;  %v1294_v7 = vpop.xlane.xlu2 %1293  ;;  %v1516_v9 = vsel %vm1513_vm14, %v1515_v4, %v1511_v55  ;;  %v1357_v47 = vsel %vm1356_vm15, %v1816_v23, %v1353_v13  ;;  %vm1397_vm1 = vweird.f32 %v1818_v2 }
 0x42c   :  { %1819 = vrcp.f32 %v1294_v7  ;;  %v1545_v32 = vmul.f32 %v1516_v9, %v2873_v16  ;;  %v1362_v12 = vsel %vm1359_vm0, %v1361_v36, %v1357_v47  ;;  %vm1398_vm3 = vmor %vm1396_vm2, %vm1397_vm1  ;;  %v1444_v33 = vand.u32 2147483648, %v1294_v7 }
 0x42d   :  { %v1393_v30 = vsub.f32 1.0, %v1392_v49  ;;  %v1534_v0 = vmul.f32 %v1362_v12, %v2874_v46  ;;  %v1442_v27 = vand.u32 2147483647, %v1294_v7  ;;  %vm1438_vm6 = vweird.f32 %v1294_v7 }
 0x42e   :  { %1619 = vperm.xlu2 %1695, %v1545_v32   ;;  %v1445_v60 = vor.u32 1.1754944e-38, %v1444_v33  ;;  %vm1665_vm1 = vcmask 1040384  }
 0x42f   :  { %v1394_v61 = vmul.f32 %v1818_v2, %v1393_v30  ;;  %1564 = vperm.xlu0 %1696, %v1534_v0   ;;  %vm1443_vm8 = vcmp.eq.f32.partialorder %v1442_v27, 8.507059e+37 }
 0x431   :  { %v1395_v8 = vadd.f32 %v1818_v2, %v1394_v61  ;;  %v2878_v61 = vld [vmem:[#allocation26_spill] sm:$0xff] }
 0x432   :  { %v1820_v10 = vpop.eup %1819 }
 0x433   :  { %v1434_v62 = vmul.f32 %v1820_v10, %v1294_v7  ;;  %v1300_v37 = vpop.xlane.xlu2 %1299  ;;  %v1399_v21 = vsel %vm1398_vm3, %v1818_v2, %v1395_v8  ;;  %vm1439_vm5 = vweird.f32 %v1820_v10  ;;  %v2877_v7 = vld [vmem:[#allocation23_spill] sm:$0xff] }
 0x434   :  { %1821 = vrcp.f32 %v1300_v37  ;;  %v1404_v19 = vsel %vm1401_vm4, %v1403_v14, %v1399_v21  ;;  %vm1440_vm7 = vmor %vm1438_vm6, %vm1439_vm5  ;;  %v1486_v57 = vand.u32 2147483648, %v1300_v37  ;;  %v1484_v45 = vand.u32 2147483647, %v1300_v37 }
 0x435   :  { %v1435_v17 = vsub.f32 1.0, %v1434_v62  ;;  %v1537_v29 = vmul.f32 %v1404_v19, %v2875_v42  ;;  %vm1480_vm10 = vweird.f32 %v1300_v37 }
 0x436   :  { %v1487_v13 = vor.u32 1.1754944e-38, %v1486_v57  ;;  %vm1485_vm12 = vcmp.eq.f32.partialorder %v1484_v45, 8.507059e+37  ;;  %v2880_v45 = vld [vmem:[#allocation34_spill] sm:$0xff] }
 0x437   :  { %v1436_v23 = vmul.f32 %v1820_v10, %v1435_v17  ;;  %1579 = vperm.xlu0 %1696, %v1537_v29  }
 0x439   :  { %v1437_v35 = vadd.f32 %v1820_v10, %v1436_v23 }
 0x43a   :  { %v1822_v31 = vpop.eup %1821 }
 0x43b   :  { %v1476_v52 = vmul.f32 %v1822_v31, %v1300_v37  ;;  %v1306_v56 = vpop.xlane.xlu2 %1305  ;;  %v1441_v26 = vsel %vm1440_vm7, %v1820_v10, %v1437_v35  ;;  %vm1481_vm9 = vweird.f32 %v1822_v31  ;;  %v1555_v10 = vpop.permute.xlu0 %1554 }
 0x43c   :  { %1823 = vrcp.f32 %v1306_v56  ;;  %v1446_v43 = vsel %vm1443_vm8, %v1445_v60, %v1441_v26  ;;  %vm1482_vm11 = vmor %vm1480_vm10, %vm1481_vm9  ;;  %v1528_v47 = vand.u32 2147483648, %v1306_v56  ;;  %v1526_v16 = vand.u32 2147483647, %v1306_v56 }
 0x43d   :  { %v1477_v50 = vsub.f32 1.0, %v1476_v52  ;;  %v1540_v44 = vmul.f32 %v1446_v43, %v2876_v15  ;;  %vm1522_vm14 = vweird.f32 %v1306_v56  ;;  %v1628_v37 = vmul.f32 %v2546_v51, %v1555_v10 }
 0x43e   :  { %v1529_v12 = vor.u32 1.1754944e-38, %v1528_v47  ;;  %vm1527_vm0 = vcmp.eq.f32.partialorder %v1526_v16, 8.507059e+37 }
 0x43f   :  { %v1478_v54 = vmul.f32 %v1822_v31, %v1477_v50  ;;  %1594 = vperm.xlu0 %1696, %v1540_v44  }
 0x441   :  { %v1479_v24 = vadd.f32 %v1822_v31, %v1478_v54  ;;  %v2879_v54 = vld [vmem:[#allocation33_spill] sm:$0xff] }
 0x442   :  { %v1824_v4 = vpop.eup %1823 }
 0x443   :  { %v1518_v2 = vmul.f32 %v1824_v4, %v1306_v56  ;;  %v1483_v55 = vsel %vm1482_vm11, %v1822_v31, %v1479_v24  ;;  %vm1523_vm13 = vweird.f32 %v1824_v4  ;;  %v891_v24 = vmul.f32 %v2880_v45, %v2772_v1 }
 0x444   :  { %v1488_v36 = vsel %vm1485_vm12, %v1487_v13, %v1483_v55  ;;  %vm1524_vm15 = vmor %vm1522_vm14, %vm1523_vm13 }
 0x445   :  { %v1519_v49 = vsub.f32 1.0, %v1518_v2  ;;  %v1543_v9 = vmul.f32 %v1488_v36, %v2877_v7 }
 0x447   :  { %v1520_v30 = vmul.f32 %v1824_v4, %v1519_v49  ;;  %1609 = vperm.xlu0 %1696, %v1543_v9  }
 0x449   :  { %v1521_v32 = vadd.f32 %v1824_v4, %v1520_v30 }
 0x44b   :  { %v1525_v46 = vsel %vm1524_vm15, %v1824_v4, %v1521_v32 }
 0x44c   :  { %v1530_v0 = vsel %vm1527_vm0, %v1529_v12, %v1525_v46 }
 0x44d   :  { %v1546_v28 = vmul.f32 %v1530_v0, %v2878_v61 }
 0x44f   :  { %1624 = vperm.xlu0 %1696, %v1546_v28  }
 0x451   :  { %v1550_v39 = vpop.permute.xlu1 %1549 }
 0x452   :  { %v1627_v62 = vmul.f32 %v2681_v41, %v1550_v39 }
 0x454   :  { %v1643_v19 = vadd.f32 %v1628_v37, %v1627_v62 }
 0x459   :  { %v1570_v14 = vpop.permute.xlu1 %1569 }
 0x45a   :  { %v1631_v33 = vmul.f32 %v2600_v25, %v1570_v14 }
 0x461   :  { %v1585_v35 = vpop.permute.xlu1 %1584 }
 0x468   :  { %v1560_v8 = vpop.permute.xlu2 %1559 }
 0x469   :  { %v1629_v21 = vmul.f32 %v2701_v18, %v1560_v8  ;;  %v1634_v18 = vmul.f32 %v2636_v34, %v1585_v35  ;;  %v1600_v43 = vpop.permute.xlu1 %1599 }
 0x46b   :  { %v1644_v29 = vadd.f32 %v1643_v19, %v1629_v21 }
 0x470   :  { %v1575_v17 = vpop.permute.xlu2 %1574 }
 0x471   :  { %v1632_v60 = vmul.f32 %v2709_v38, %v1575_v17  ;;  %v890_v38 = vmul.f32 %v2879_v54, %v2757_v11  ;;  %v1615_v55 = vpop.permute.xlu1 %1614 }
 0x472   :  { %v1640_v11 = vmul.f32 %v2683_v22, %v1615_v55 }
 0x473   :  { %v905_v34 = vadd.f32 %v2731_v40, %v890_v38 }
 0x475   :  { %v906_v2 = vadd.f32 %v905_v34, %v891_v24 }
 0x477   :  { %v907_v7 = vrot.slane %v906_v2, 4 }
 0x478   :  { %v1590_v52 = vpop.permute.xlu2 %1589 }
 0x479   :  { %v1635_v57 = vmul.f32 %v2717_v58, %v1590_v52  ;;  %v908_v30 = vadd.f32 %v907_v7, %v906_v2 }
 0x47b   :  { %v909_v12 = vrot.slane %v908_v30, 2 }
 0x47d   :  { %v910_v0 = vadd.f32 %v909_v12, %v908_v30 }
 0x47f   :  { %v911_v28 = vrot.slane %v910_v0, 1 }
 0x480   :  { %v1605_v44 = vpop.permute.xlu2 %1604 }
 0x481   :  { %v1638_v58 = vmul.f32 %v2724_v5, %v1605_v44  ;;  %v912_v22 = vadd.f32 %v911_v28, %v910_v0 }
 0x488   :  { %v1620_v47 = vpop.permute.xlu2 %1619 }
 0x4a1   :  { %v1565_v42 = vpop.permute.xlu0 %1564 }
 0x4a2   :  { %v1630_v23 = vmul.f32 %v2735_v20, %v1565_v42 }
 0x4a4   :  { %v1645_v27 = vadd.f32 %v1644_v29, %v1630_v23 }
 0x4a6   :  { %v1646_v31 = vadd.f32 %v1645_v27, %v1631_v33 }
 0x4a8   :  { %v1647_v51 = vadd.f32 %v1646_v31, %v1632_v60 }
 0x4a9   :  { %v1580_v56 = vpop.permute.xlu0 %1579 }
 0x4aa   :  { %v1633_v41 = vmul.f32 %v2742_v59, %v1580_v56  ;;  %v1637_v59 = vmul.f32 %v2665_v53, %v1600_v43  ;;  %v1641_v53 = vmul.f32 %v2733_v48, %v1620_v47 }
 0x4ac   :  { %v1648_v26 = vadd.f32 %v1647_v51, %v1633_v41 }
 0x4ae   :  { %v1649_v50 = vadd.f32 %v1648_v26, %v1634_v18 }
 0x4b0   :  { %v1650_v15 = vadd.f32 %v1649_v50, %v1635_v57 }
 0x4b1   :  { %v1595_v20 = vpop.permute.xlu0 %1594 }
 0x4b2   :  { %v1636_v25 = vmul.f32 %v2748_v6, %v1595_v20 }
 0x4b4   :  { %v1651_v4 = vadd.f32 %v1650_v15, %v1636_v25 }
 0x4b6   :  { %v1652_v13 = vadd.f32 %v1651_v4, %v1637_v59 }
 0x4b8   :  { %v1653_v49 = vadd.f32 %v1652_v13, %v1638_v58 }
 0x4b9   :  { %v1610_v36 = vpop.permute.xlu0 %1609 }
 0x4ba   :  { %v1639_v6 = vmul.f32 %v2754_v63, %v1610_v36 }
 0x4bc   :  { %v1654_v9 = vadd.f32 %v1653_v49, %v1639_v6 }
 0x4be   :  { %v1655_v1 = vadd.f32 %v1654_v9, %v1640_v11 }
 0x4c0   :  { %v1656_v32 = vadd.f32 %v1655_v1, %v1641_v53 }
 0x4c1   :  { %v1625_v16 = vpop.permute.xlu0 %1624 }
 0x4c2   :  { %v1642_v40 = vmul.f32 %v2759_v3, %v1625_v16  ;;  %v1825_v3 = vld [vmem:[#allocation2] sm:$0x3] }
 0x4c4   :  { %v1657_v5 = vadd.f32 %v1656_v32, %v1642_v40 }
 0x4c6   :  { %v1658_v46 = vrot.slane %v1657_v5, 4 }
 0x4c8   :  { %v1659_v61 = vadd.f32 %v1658_v46, %v1657_v5 }
 0x4ca   :  { %v1660_v63 = vrot.slane %v1659_v61, 2 }
 0x4cc   :  { %v1661_v39 = vadd.f32 %v1660_v63, %v1659_v61 }
 0x4ce   :  { %v1662_v8 = vrot.slane %v1661_v39, 1 }
 0x4d0   :  { %v1663_v10 = vadd.f32 %v1662_v8, %v1661_v39 }
 0x4d2   :  { %v1666_v48 = vsel %vm1665_vm1, %v912_v22, %v1663_v10 }
 0x4d3   :  { %v1667_v14 = vadd.f32 %v1825_v3, %v1666_v48 }
 0x4d5   :  { %1668 = vst [vmem:[#allocation7] sm:$0x3] %v1667_v14 }
 0x4d6   :  { %1679 = dma.vmem_to_hbm [thread:$0]  %s1675_s24, 32, %s1677_s27, [#allocation4]  }
 0x4d7   :  { %1902 = dma.done.wait [#allocation4], 32  }
 0x4d8   :  { %1903 = vsyncadd [#allocation4], 4294967264 }
 0x4d9   :  { %1684 = vsyncpa [#allocation3], 1 }
 0x4da   :  { %1685 = vsyncpa [#allocation6], 1 }
 0x4db   :  { %1686 = vsyncpa [#allocation4], 1 }

</bundles_post_ra>
